<compile_context>
chip_gen: v7x
topology: tpu7x:2x2x1
jax: 0.10.0
libtpu: 0.0.40
codegen_flags: <defaults>
</compile_context>

<pallas_src>
import jax
import jax.numpy as jnp
import numpy as np
from jax.experimental import pallas as pl
from jax.experimental.pallas import tpu as pltpu  # noqa: F401  (TPU backend)


# ----------------------------------------------------------------------------
# Fused Pallas kernel: num_layers x LSTM + Linear(hidden, 1) + sigmoid
# ----------------------------------------------------------------------------
def _lstm_cell(gates, c, H):
    """gates: (B, 4H) pre-activation, c: (B, H).  Returns (h_new, c_new)."""
    # Full-width transcendentals (EUP), then static lane slices.
    sg = jax.nn.sigmoid(gates)          # (B, 4H)
    th = jnp.tanh(gates)                # (B, 4H)
    i_g = sg[:, 0 * H:1 * H]
    f_g = sg[:, 1 * H:2 * H]
    g_g = th[:, 2 * H:3 * H]
    o_g = sg[:, 3 * H:4 * H]
    c_new = f_g * c + i_g * g_g
    h_new = o_g * jnp.tanh(c_new)
    return h_new, c_new


def make_fused_lstm_kernel(num_layers, T, B, H):
    """Builds a kernel taking (x, [wih_t, whh_t, bias] * L, w_fc, b_fc, out)."""

    def kernel(*refs):
        x_ref = refs[0]                                   # (B, T, F)
        layer_refs = refs[1:1 + 3 * num_layers]
        w_fc_ref = refs[1 + 3 * num_layers]               # (1, H)
        b_fc_ref = refs[2 + 3 * num_layers]               # (1, 1)
        out_ref = refs[3 + 3 * num_layers]                # (B, 1)

        # Stage x as time-major rows: seq[t*B + b, :] = x[b, t, :].
        # Static slices + one concatenate (all in VMEM, ~1 KiB).
        x = x_ref[...]
        seq = jnp.concatenate([x[:, t, :] for t in range(T)], axis=0)  # (T*B, F)

        h = None
        for layer in range(num_layers):
            wih_t = layer_refs[3 * layer + 0][...]        # (F_l, 4H)
            whh_t = layer_refs[3 * layer + 1][...]        # (H,  4H)
            bias = layer_refs[3 * layer + 2][...]         # (1,  4H)

            # Hoisted input projection for the whole sequence: ONE MXU matmul.
            gx = jnp.dot(seq, wih_t,
                         preferred_element_type=jnp.float32) + bias   # (T*B, 4H)

            h = jnp.zeros((B, H), jnp.float32)
            c = jnp.zeros((B, H), jnp.float32)
            hs = []
            # Fully unrolled recurrence: 1 matmul on the serial chain per step.
            for t in range(T):
                gates = gx[t * B:(t + 1) * B, :] + jnp.dot(
                    h, whh_t, preferred_element_type=jnp.float32)
                h, c = _lstm_cell(gates, c, H)
                if layer < num_layers - 1:
                    hs.append(h)
            if layer < num_layers - 1:
                seq = jnp.concatenate(hs, axis=0)          # (T*B, H)

        # Fused FC(hidden, 1) + sigmoid on the last hidden state.
        # Computed as a VPU/XLU reduction to avoid a 1-wide MXU matmul.
        logits = jnp.sum(h * w_fc_ref[...], axis=1, keepdims=True) + b_fc_ref[...]
        out_ref[...] = jax.nn.sigmoid(logits)              # (B, 1)

    return kernel


# ----------------------------------------------------------------------------
# Wrapper
# ----------------------------------------------------------------------------
@jax.jit
def lstm_binary_classifier_forward(x, layer_params, w_fc, b_fc):
    """x: (B, T, input_size) -> probabilities (B,)."""
    B, T, _ = x.shape
    H = layer_params[0][1].shape[0]
    num_layers = len(layer_params)

    flat_params = []
    for (wih_t, whh_t, bias) in layer_params:
        flat_params.extend([wih_t, whh_t, bias])

    kernel = make_fused_lstm_kernel(num_layers, T, B, H)
    probs = pl.pallas_call(
        kernel,
        out_shape=jax.ShapeDtypeStruct((B, 1), jnp.float32),
    )(x, *flat_params, w_fc, b_fc)
    return probs[:, 0]                                     # .squeeze(1)


# ----------------------------------------------------------------------------
# Pure-JAX reference (for correctness check)
# ----------------------------------------------------------------------------
def reference_forward(x, layer_params, w_fc, b_fc):
    seq = jnp.transpose(x, (1, 0, 2))                      # (T, B, F)
    B = seq.shape[1]
    for (wih_t, whh_t, bias) in layer_params:
        H = whh_t.shape[0]

        def step(carry, x_t, wih_t=wih_t, whh_t=whh_t, bias=bias, H=H):
            h, c = carry
            gates = x_t @ wih_t + h @ whh_t + bias[0]
            i_g = jax.nn.sigmoid(gates[:, 0 * H:1 * H])
            f_g = jax.nn.sigmoid(gates[:, 1 * H:2 * H])
            g_g = jnp.tanh(gates[:, 2 * H:3 * H])
            o_g = jax.nn.sigmoid(gates[:, 3 * H:4 * H])
            c = f_g * c + i_g * g_g
            h = o_g * jnp.tanh(c)
            return (h, c), h

        init = (jnp.zeros((B, H), jnp.float32), jnp.zeros((B, H), jnp.float32))
        _, seq = jax.lax.scan(step, init, seq)
    logits = seq[-1] @ w_fc.T + b_fc                       # (B, 1)
    return jax.nn.sigmoid(logits)[:, 0]


# ----------------------------------------------------------------------------
# Parameter construction (matches PyTorch shapes / init ranges, gate order ifgo)
# ----------------------------------------------------------------------------
def init_params(key, input_size, hidden_size, num_layers):
    bound = 1.0 / np.sqrt(hidden_size)
    layer_params = []
    for layer in range(num_layers):
        in_f = input_size if layer == 0 else hidden_size
        key, k1, k2, k3, k4 = jax.random.split(key, 5)
        w_ih = jax.random.uniform(k1, (4 * hidden_size, in_f),
                                  jnp.float32, -bound, bound)
        w_hh = jax.random.uniform(k2, (4 * hidden_size, hidden_size),
                                  jnp.float32, -bound, bound)
        b_ih = jax.random.uniform(k3, (4 * hidden_size,),
                                  jnp.float32, -bound, bound)
        b_hh = jax.random.uniform(k4, (4 * hidden_size,),
                                  jnp.float32, -bound, bound)
        # Pre-transpose weights; fold the two biases together.
        layer_params.append(
            (w_ih.T, w_hh.T, (b_ih + b_hh).reshape(1, 4 * hidden_size))
        )
    key, k5, k6 = jax.random.split(key, 3)
    w_fc = jax.random.uniform(k5, (1, hidden_size), jnp.float32, -bound, bound)
    b_fc = jax.random.uniform(k6, (1,), jnp.float32, -bound, bound)
    return tuple(layer_params), w_fc, b_fc.reshape(1, 1)


# ----------------------------------------------------------------------------
# Main
# ----------------------------------------------------------------------------
if __name__ == "__main__":
    BATCH = 2
    SEQ = 8
    INPUT_SIZE = 16
    HIDDEN_SIZE = 32
    NUM_LAYERS = 2

    key = jax.random.PRNGKey(0)
    key, xk = jax.random.split(key)
    x = jax.random.normal(xk, (BATCH, SEQ, INPUT_SIZE), dtype=jnp.float32)

    layer_params, w_fc, b_fc = init_params(
        key, INPUT_SIZE, HIDDEN_SIZE, NUM_LAYERS
    )

    out = lstm_binary_classifier_forward(x, layer_params, w_fc, b_fc)
    out = jax.block_until_ready(out)

    ref = reference_forward(x, layer_params, w_fc, b_fc)
    ref = jax.block_until_ready(ref)

    assert out.shape == (BATCH,), out.shape
    np.testing.assert_allclose(np.asarray(out), np.asarray(ref),
                               rtol=1e-5, atol=1e-5)
    print("KERNEL_OK")
</pallas_src>

<mosaic_0001>
module attributes {stable_mosaic.version = 11 : i64} {
  func.func @kernel(%arg0: memref<2x8x16xf32, #tpu.memory_space<vmem>>, %arg1: memref<16x128xf32, #tpu.memory_space<vmem>>, %arg2: memref<32x128xf32, #tpu.memory_space<vmem>>, %arg3: memref<1x128xf32, #tpu.memory_space<vmem>>, %arg4: memref<32x128xf32, #tpu.memory_space<vmem>>, %arg5: memref<32x128xf32, #tpu.memory_space<vmem>>, %arg6: memref<1x128xf32, #tpu.memory_space<vmem>>, %arg7: memref<1x32xf32, #tpu.memory_space<vmem>>, %arg8: memref<1x1xf32, #tpu.memory_space<vmem>>, %arg9: memref<2x1xf32, #tpu.memory_space<vmem>>) attributes {dimension_semantics = [], scalar_prefetch = 0 : i64, scratch_operands = 0 : i64, tpu.core_type = #tpu.core_type<tc>} {
    %c0 = arith.constant 0 : index
    %c0_0 = arith.constant 0 : index
    %c0_1 = arith.constant 0 : index
    %0 = vector.load %arg0[%c0, %c0_0, %c0_1] : memref<2x8x16xf32, #tpu.memory_space<vmem>>, vector<2x8x16xf32>
    %1 = vector.extract_strided_slice %0 {offsets = [0, 0, 0], sizes = [2, 1, 16], strides = [1, 1, 1]} : vector<2x8x16xf32> to vector<2x1x16xf32>
    %2 = vector.shape_cast %1 : vector<2x1x16xf32> to vector<2x16xf32>
    %3 = vector.extract_strided_slice %0 {offsets = [0, 1, 0], sizes = [2, 1, 16], strides = [1, 1, 1]} : vector<2x8x16xf32> to vector<2x1x16xf32>
    %4 = vector.shape_cast %3 : vector<2x1x16xf32> to vector<2x16xf32>
    %5 = vector.extract_strided_slice %0 {offsets = [0, 2, 0], sizes = [2, 1, 16], strides = [1, 1, 1]} : vector<2x8x16xf32> to vector<2x1x16xf32>
    %6 = vector.shape_cast %5 : vector<2x1x16xf32> to vector<2x16xf32>
    %7 = vector.extract_strided_slice %0 {offsets = [0, 3, 0], sizes = [2, 1, 16], strides = [1, 1, 1]} : vector<2x8x16xf32> to vector<2x1x16xf32>
    %8 = vector.shape_cast %7 : vector<2x1x16xf32> to vector<2x16xf32>
    %9 = vector.extract_strided_slice %0 {offsets = [0, 4, 0], sizes = [2, 1, 16], strides = [1, 1, 1]} : vector<2x8x16xf32> to vector<2x1x16xf32>
    %10 = vector.shape_cast %9 : vector<2x1x16xf32> to vector<2x16xf32>
    %11 = vector.extract_strided_slice %0 {offsets = [0, 5, 0], sizes = [2, 1, 16], strides = [1, 1, 1]} : vector<2x8x16xf32> to vector<2x1x16xf32>
    %12 = vector.shape_cast %11 : vector<2x1x16xf32> to vector<2x16xf32>
    %13 = vector.extract_strided_slice %0 {offsets = [0, 6, 0], sizes = [2, 1, 16], strides = [1, 1, 1]} : vector<2x8x16xf32> to vector<2x1x16xf32>
    %14 = vector.shape_cast %13 : vector<2x1x16xf32> to vector<2x16xf32>
    %15 = vector.extract_strided_slice %0 {offsets = [0, 7, 0], sizes = [2, 1, 16], strides = [1, 1, 1]} : vector<2x8x16xf32> to vector<2x1x16xf32>
    %16 = vector.shape_cast %15 : vector<2x1x16xf32> to vector<2x16xf32>
    %17 = tpu.concatenate %2, %4, %6, %8, %10, %12, %14, %16 in 0 : vector<2x16xf32>, vector<2x16xf32>, vector<2x16xf32>, vector<2x16xf32>, vector<2x16xf32>, vector<2x16xf32>, vector<2x16xf32>, vector<2x16xf32> -> vector<16x16xf32>
    %c0_2 = arith.constant 0 : index
    %c0_3 = arith.constant 0 : index
    %18 = vector.load %arg1[%c0_2, %c0_3] : memref<16x128xf32, #tpu.memory_space<vmem>>, vector<16x128xf32>
    %c0_4 = arith.constant 0 : index
    %c0_5 = arith.constant 0 : index
    %19 = vector.load %arg2[%c0_4, %c0_5] : memref<32x128xf32, #tpu.memory_space<vmem>>, vector<32x128xf32>
    %c0_6 = arith.constant 0 : index
    %c0_7 = arith.constant 0 : index
    %20 = vector.load %arg3[%c0_6, %c0_7] : memref<1x128xf32, #tpu.memory_space<vmem>>, vector<1x128xf32>
    %cst = arith.constant dense<0.000000e+00> : vector<16x128xf32>
    %21 = tpu.matmul %17, %18, %cst {dimension_numbers = #tpu.dot_dimension_numbers<[1], [0], [0], [1], [0, 0, 1, 1], [], []>} : vector<16x16xf32>, vector<16x128xf32>, vector<16x128xf32> -> vector<16x128xf32>
    %22 = vector.broadcast %20 : vector<1x128xf32> to vector<16x128xf32>
    %23 = arith.addf %21, %22 : vector<16x128xf32>
    %cst_8 = arith.constant 0.000000e+00 : f32
    %24 = vector.broadcast %cst_8 : f32 to vector<2x32xf32>
    %cst_9 = arith.constant 0.000000e+00 : f32
    %25 = vector.broadcast %cst_9 : f32 to vector<2x32xf32>
    %26 = vector.extract_strided_slice %23 {offsets = [0, 0], sizes = [2, 128], strides = [1, 1]} : vector<16x128xf32> to vector<2x128xf32>
    %cst_10 = arith.constant dense<0.000000e+00> : vector<2x128xf32>
    %27 = tpu.matmul %24, %19, %cst_10 {dimension_numbers = #tpu.dot_dimension_numbers<[1], [0], [0], [1], [0, 0, 1, 1], [], []>} : vector<2x32xf32>, vector<32x128xf32>, vector<2x128xf32> -> vector<2x128xf32>
    %28 = arith.addf %26, %27 : vector<2x128xf32>
    %29 = arith.negf %28 : vector<2x128xf32>
    %30 = math.exp %29 : vector<2x128xf32>
    %cst_11 = arith.constant 1.000000e+00 : f32
    %31 = vector.broadcast %cst_11 : f32 to vector<2x128xf32>
    %32 = arith.addf %31, %30 : vector<2x128xf32>
    %33 = arith.divf %31, %32 : vector<2x128xf32>
    %34 = math.tanh %28 : vector<2x128xf32>
    %35 = vector.extract_strided_slice %33 {offsets = [0, 0], sizes = [2, 32], strides = [1, 1]} : vector<2x128xf32> to vector<2x32xf32>
    %36 = vector.extract_strided_slice %33 {offsets = [0, 32], sizes = [2, 32], strides = [1, 1]} : vector<2x128xf32> to vector<2x32xf32>
    %37 = vector.extract_strided_slice %34 {offsets = [0, 64], sizes = [2, 32], strides = [1, 1]} : vector<2x128xf32> to vector<2x32xf32>
    %38 = vector.extract_strided_slice %33 {offsets = [0, 96], sizes = [2, 32], strides = [1, 1]} : vector<2x128xf32> to vector<2x32xf32>
    %39 = arith.mulf %36, %25 : vector<2x32xf32>
    %40 = arith.mulf %35, %37 : vector<2x32xf32>
    %41 = arith.addf %39, %40 : vector<2x32xf32>
    %42 = math.tanh %41 : vector<2x32xf32>
    %43 = arith.mulf %38, %42 : vector<2x32xf32>
    %44 = vector.extract_strided_slice %23 {offsets = [2, 0], sizes = [2, 128], strides = [1, 1]} : vector<16x128xf32> to vector<2x128xf32>
    %cst_12 = arith.constant dense<0.000000e+00> : vector<2x128xf32>
    %45 = tpu.matmul %43, %19, %cst_12 {dimension_numbers = #tpu.dot_dimension_numbers<[1], [0], [0], [1], [0, 0, 1, 1], [], []>} : vector<2x32xf32>, vector<32x128xf32>, vector<2x128xf32> -> vector<2x128xf32>
    %46 = arith.addf %44, %45 : vector<2x128xf32>
    %47 = arith.negf %46 : vector<2x128xf32>
    %48 = math.exp %47 : vector<2x128xf32>
    %cst_13 = arith.constant 1.000000e+00 : f32
    %49 = vector.broadcast %cst_13 : f32 to vector<2x128xf32>
    %50 = arith.addf %49, %48 : vector<2x128xf32>
    %51 = arith.divf %49, %50 : vector<2x128xf32>
    %52 = math.tanh %46 : vector<2x128xf32>
    %53 = vector.extract_strided_slice %51 {offsets = [0, 0], sizes = [2, 32], strides = [1, 1]} : vector<2x128xf32> to vector<2x32xf32>
    %54 = vector.extract_strided_slice %51 {offsets = [0, 32], sizes = [2, 32], strides = [1, 1]} : vector<2x128xf32> to vector<2x32xf32>
    %55 = vector.extract_strided_slice %52 {offsets = [0, 64], sizes = [2, 32], strides = [1, 1]} : vector<2x128xf32> to vector<2x32xf32>
    %56 = vector.extract_strided_slice %51 {offsets = [0, 96], sizes = [2, 32], strides = [1, 1]} : vector<2x128xf32> to vector<2x32xf32>
    %57 = arith.mulf %54, %41 : vector<2x32xf32>
    %58 = arith.mulf %53, %55 : vector<2x32xf32>
    %59 = arith.addf %57, %58 : vector<2x32xf32>
    %60 = math.tanh %59 : vector<2x32xf32>
    %61 = arith.mulf %56, %60 : vector<2x32xf32>
    %62 = vector.extract_strided_slice %23 {offsets = [4, 0], sizes = [2, 128], strides = [1, 1]} : vector<16x128xf32> to vector<2x128xf32>
    %cst_14 = arith.constant dense<0.000000e+00> : vector<2x128xf32>
    %63 = tpu.matmul %61, %19, %cst_14 {dimension_numbers = #tpu.dot_dimension_numbers<[1], [0], [0], [1], [0, 0, 1, 1], [], []>} : vector<2x32xf32>, vector<32x128xf32>, vector<2x128xf32> -> vector<2x128xf32>
    %64 = arith.addf %62, %63 : vector<2x128xf32>
    %65 = arith.negf %64 : vector<2x128xf32>
    %66 = math.exp %65 : vector<2x128xf32>
    %cst_15 = arith.constant 1.000000e+00 : f32
    %67 = vector.broadcast %cst_15 : f32 to vector<2x128xf32>
    %68 = arith.addf %67, %66 : vector<2x128xf32>
    %69 = arith.divf %67, %68 : vector<2x128xf32>
    %70 = math.tanh %64 : vector<2x128xf32>
    %71 = vector.extract_strided_slice %69 {offsets = [0, 0], sizes = [2, 32], strides = [1, 1]} : vector<2x128xf32> to vector<2x32xf32>
    %72 = vector.extract_strided_slice %69 {offsets = [0, 32], sizes = [2, 32], strides = [1, 1]} : vector<2x128xf32> to vector<2x32xf32>
    %73 = vector.extract_strided_slice %70 {offsets = [0, 64], sizes = [2, 32], strides = [1, 1]} : vector<2x128xf32> to vector<2x32xf32>
    %74 = vector.extract_strided_slice %69 {offsets = [0, 96], sizes = [2, 32], strides = [1, 1]} : vector<2x128xf32> to vector<2x32xf32>
    %75 = arith.mulf %72, %59 : vector<2x32xf32>
    %76 = arith.mulf %71, %73 : vector<2x32xf32>
    %77 = arith.addf %75, %76 : vector<2x32xf32>
    %78 = math.tanh %77 : vector<2x32xf32>
    %79 = arith.mulf %74, %78 : vector<2x32xf32>
    %80 = vector.extract_strided_slice %23 {offsets = [6, 0], sizes = [2, 128], strides = [1, 1]} : vector<16x128xf32> to vector<2x128xf32>
    %cst_16 = arith.constant dense<0.000000e+00> : vector<2x128xf32>
    %81 = tpu.matmul %79, %19, %cst_16 {dimension_numbers = #tpu.dot_dimension_numbers<[1], [0], [0], [1], [0, 0, 1, 1], [], []>} : vector<2x32xf32>, vector<32x128xf32>, vector<2x128xf32> -> vector<2x128xf32>
    %82 = arith.addf %80, %81 : vector<2x128xf32>
    %83 = arith.negf %82 : vector<2x128xf32>
    %84 = math.exp %83 : vector<2x128xf32>
    %cst_17 = arith.constant 1.000000e+00 : f32
    %85 = vector.broadcast %cst_17 : f32 to vector<2x128xf32>
    %86 = arith.addf %85, %84 : vector<2x128xf32>
    %87 = arith.divf %85, %86 : vector<2x128xf32>
    %88 = math.tanh %82 : vector<2x128xf32>
    %89 = vector.extract_strided_slice %87 {offsets = [0, 0], sizes = [2, 32], strides = [1, 1]} : vector<2x128xf32> to vector<2x32xf32>
    %90 = vector.extract_strided_slice %87 {offsets = [0, 32], sizes = [2, 32], strides = [1, 1]} : vector<2x128xf32> to vector<2x32xf32>
    %91 = vector.extract_strided_slice %88 {offsets = [0, 64], sizes = [2, 32], strides = [1, 1]} : vector<2x128xf32> to vector<2x32xf32>
    %92 = vector.extract_strided_slice %87 {offsets = [0, 96], sizes = [2, 32], strides = [1, 1]} : vector<2x128xf32> to vector<2x32xf32>
    %93 = arith.mulf %90, %77 : vector<2x32xf32>
    %94 = arith.mulf %89, %91 : vector<2x32xf32>
    %95 = arith.addf %93, %94 : vector<2x32xf32>
    %96 = math.tanh %95 : vector<2x32xf32>
    %97 = arith.mulf %92, %96 : vector<2x32xf32>
    %98 = vector.extract_strided_slice %23 {offsets = [8, 0], sizes = [2, 128], strides = [1, 1]} : vector<16x128xf32> to vector<2x128xf32>
    %cst_18 = arith.constant dense<0.000000e+00> : vector<2x128xf32>
    %99 = tpu.matmul %97, %19, %cst_18 {dimension_numbers = #tpu.dot_dimension_numbers<[1], [0], [0], [1], [0, 0, 1, 1], [], []>} : vector<2x32xf32>, vector<32x128xf32>, vector<2x128xf32> -> vector<2x128xf32>
    %100 = arith.addf %98, %99 : vector<2x128xf32>
    %101 = arith.negf %100 : vector<2x128xf32>
    %102 = math.exp %101 : vector<2x128xf32>
    %cst_19 = arith.constant 1.000000e+00 : f32
    %103 = vector.broadcast %cst_19 : f32 to vector<2x128xf32>
    %104 = arith.addf %103, %102 : vector<2x128xf32>
    %105 = arith.divf %103, %104 : vector<2x128xf32>
    %106 = math.tanh %100 : vector<2x128xf32>
    %107 = vector.extract_strided_slice %105 {offsets = [0, 0], sizes = [2, 32], strides = [1, 1]} : vector<2x128xf32> to vector<2x32xf32>
    %108 = vector.extract_strided_slice %105 {offsets = [0, 32], sizes = [2, 32], strides = [1, 1]} : vector<2x128xf32> to vector<2x32xf32>
    %109 = vector.extract_strided_slice %106 {offsets = [0, 64], sizes = [2, 32], strides = [1, 1]} : vector<2x128xf32> to vector<2x32xf32>
    %110 = vector.extract_strided_slice %105 {offsets = [0, 96], sizes = [2, 32], strides = [1, 1]} : vector<2x128xf32> to vector<2x32xf32>
    %111 = arith.mulf %108, %95 : vector<2x32xf32>
    %112 = arith.mulf %107, %109 : vector<2x32xf32>
    %113 = arith.addf %111, %112 : vector<2x32xf32>
    %114 = math.tanh %113 : vector<2x32xf32>
    %115 = arith.mulf %110, %114 : vector<2x32xf32>
    %116 = vector.extract_strided_slice %23 {offsets = [10, 0], sizes = [2, 128], strides = [1, 1]} : vector<16x128xf32> to vector<2x128xf32>
    %cst_20 = arith.constant dense<0.000000e+00> : vector<2x128xf32>
    %117 = tpu.matmul %115, %19, %cst_20 {dimension_numbers = #tpu.dot_dimension_numbers<[1], [0], [0], [1], [0, 0, 1, 1], [], []>} : vector<2x32xf32>, vector<32x128xf32>, vector<2x128xf32> -> vector<2x128xf32>
    %118 = arith.addf %116, %117 : vector<2x128xf32>
    %119 = arith.negf %118 : vector<2x128xf32>
    %120 = math.exp %119 : vector<2x128xf32>
    %cst_21 = arith.constant 1.000000e+00 : f32
    %121 = vector.broadcast %cst_21 : f32 to vector<2x128xf32>
    %122 = arith.addf %121, %120 : vector<2x128xf32>
    %123 = arith.divf %121, %122 : vector<2x128xf32>
    %124 = math.tanh %118 : vector<2x128xf32>
    %125 = vector.extract_strided_slice %123 {offsets = [0, 0], sizes = [2, 32], strides = [1, 1]} : vector<2x128xf32> to vector<2x32xf32>
    %126 = vector.extract_strided_slice %123 {offsets = [0, 32], sizes = [2, 32], strides = [1, 1]} : vector<2x128xf32> to vector<2x32xf32>
    %127 = vector.extract_strided_slice %124 {offsets = [0, 64], sizes = [2, 32], strides = [1, 1]} : vector<2x128xf32> to vector<2x32xf32>
    %128 = vector.extract_strided_slice %123 {offsets = [0, 96], sizes = [2, 32], strides = [1, 1]} : vector<2x128xf32> to vector<2x32xf32>
    %129 = arith.mulf %126, %113 : vector<2x32xf32>
    %130 = arith.mulf %125, %127 : vector<2x32xf32>
    %131 = arith.addf %129, %130 : vector<2x32xf32>
    %132 = math.tanh %131 : vector<2x32xf32>
    %133 = arith.mulf %128, %132 : vector<2x32xf32>
    %134 = vector.extract_strided_slice %23 {offsets = [12, 0], sizes = [2, 128], strides = [1, 1]} : vector<16x128xf32> to vector<2x128xf32>
    %cst_22 = arith.constant dense<0.000000e+00> : vector<2x128xf32>
    %135 = tpu.matmul %133, %19, %cst_22 {dimension_numbers = #tpu.dot_dimension_numbers<[1], [0], [0], [1], [0, 0, 1, 1], [], []>} : vector<2x32xf32>, vector<32x128xf32>, vector<2x128xf32> -> vector<2x128xf32>
    %136 = arith.addf %134, %135 : vector<2x128xf32>
    %137 = arith.negf %136 : vector<2x128xf32>
    %138 = math.exp %137 : vector<2x128xf32>
    %cst_23 = arith.constant 1.000000e+00 : f32
    %139 = vector.broadcast %cst_23 : f32 to vector<2x128xf32>
    %140 = arith.addf %139, %138 : vector<2x128xf32>
    %141 = arith.divf %139, %140 : vector<2x128xf32>
    %142 = math.tanh %136 : vector<2x128xf32>
    %143 = vector.extract_strided_slice %141 {offsets = [0, 0], sizes = [2, 32], strides = [1, 1]} : vector<2x128xf32> to vector<2x32xf32>
    %144 = vector.extract_strided_slice %141 {offsets = [0, 32], sizes = [2, 32], strides = [1, 1]} : vector<2x128xf32> to vector<2x32xf32>
    %145 = vector.extract_strided_slice %142 {offsets = [0, 64], sizes = [2, 32], strides = [1, 1]} : vector<2x128xf32> to vector<2x32xf32>
    %146 = vector.extract_strided_slice %141 {offsets = [0, 96], sizes = [2, 32], strides = [1, 1]} : vector<2x128xf32> to vector<2x32xf32>
    %147 = arith.mulf %144, %131 : vector<2x32xf32>
    %148 = arith.mulf %143, %145 : vector<2x32xf32>
    %149 = arith.addf %147, %148 : vector<2x32xf32>
    %150 = math.tanh %149 : vector<2x32xf32>
    %151 = arith.mulf %146, %150 : vector<2x32xf32>
    %152 = vector.extract_strided_slice %23 {offsets = [14, 0], sizes = [2, 128], strides = [1, 1]} : vector<16x128xf32> to vector<2x128xf32>
    %cst_24 = arith.constant dense<0.000000e+00> : vector<2x128xf32>
    %153 = tpu.matmul %151, %19, %cst_24 {dimension_numbers = #tpu.dot_dimension_numbers<[1], [0], [0], [1], [0, 0, 1, 1], [], []>} : vector<2x32xf32>, vector<32x128xf32>, vector<2x128xf32> -> vector<2x128xf32>
    %154 = arith.addf %152, %153 : vector<2x128xf32>
    %155 = arith.negf %154 : vector<2x128xf32>
    %156 = math.exp %155 : vector<2x128xf32>
    %cst_25 = arith.constant 1.000000e+00 : f32
    %157 = vector.broadcast %cst_25 : f32 to vector<2x128xf32>
    %158 = arith.addf %157, %156 : vector<2x128xf32>
    %159 = arith.divf %157, %158 : vector<2x128xf32>
    %160 = math.tanh %154 : vector<2x128xf32>
    %161 = vector.extract_strided_slice %159 {offsets = [0, 0], sizes = [2, 32], strides = [1, 1]} : vector<2x128xf32> to vector<2x32xf32>
    %162 = vector.extract_strided_slice %159 {offsets = [0, 32], sizes = [2, 32], strides = [1, 1]} : vector<2x128xf32> to vector<2x32xf32>
    %163 = vector.extract_strided_slice %160 {offsets = [0, 64], sizes = [2, 32], strides = [1, 1]} : vector<2x128xf32> to vector<2x32xf32>
    %164 = vector.extract_strided_slice %159 {offsets = [0, 96], sizes = [2, 32], strides = [1, 1]} : vector<2x128xf32> to vector<2x32xf32>
    %165 = arith.mulf %162, %149 : vector<2x32xf32>
    %166 = arith.mulf %161, %163 : vector<2x32xf32>
    %167 = arith.addf %165, %166 : vector<2x32xf32>
    %168 = math.tanh %167 : vector<2x32xf32>
    %169 = arith.mulf %164, %168 : vector<2x32xf32>
    %170 = tpu.concatenate %43, %61, %79, %97, %115, %133, %151, %169 in 0 : vector<2x32xf32>, vector<2x32xf32>, vector<2x32xf32>, vector<2x32xf32>, vector<2x32xf32>, vector<2x32xf32>, vector<2x32xf32>, vector<2x32xf32> -> vector<16x32xf32>
    %c0_26 = arith.constant 0 : index
    %c0_27 = arith.constant 0 : index
    %171 = vector.load %arg4[%c0_26, %c0_27] : memref<32x128xf32, #tpu.memory_space<vmem>>, vector<32x128xf32>
    %c0_28 = arith.constant 0 : index
    %c0_29 = arith.constant 0 : index
    %172 = vector.load %arg5[%c0_28, %c0_29] : memref<32x128xf32, #tpu.memory_space<vmem>>, vector<32x128xf32>
    %c0_30 = arith.constant 0 : index
    %c0_31 = arith.constant 0 : index
    %173 = vector.load %arg6[%c0_30, %c0_31] : memref<1x128xf32, #tpu.memory_space<vmem>>, vector<1x128xf32>
    %cst_32 = arith.constant dense<0.000000e+00> : vector<16x128xf32>
    %174 = tpu.matmul %170, %171, %cst_32 {dimension_numbers = #tpu.dot_dimension_numbers<[1], [0], [0], [1], [0, 0, 1, 1], [], []>} : vector<16x32xf32>, vector<32x128xf32>, vector<16x128xf32> -> vector<16x128xf32>
    %175 = vector.broadcast %173 : vector<1x128xf32> to vector<16x128xf32>
    %176 = arith.addf %174, %175 : vector<16x128xf32>
    %cst_33 = arith.constant 0.000000e+00 : f32
    %177 = vector.broadcast %cst_33 : f32 to vector<2x32xf32>
    %cst_34 = arith.constant 0.000000e+00 : f32
    %178 = vector.broadcast %cst_34 : f32 to vector<2x32xf32>
    %179 = vector.extract_strided_slice %176 {offsets = [0, 0], sizes = [2, 128], strides = [1, 1]} : vector<16x128xf32> to vector<2x128xf32>
    %cst_35 = arith.constant dense<0.000000e+00> : vector<2x128xf32>
    %180 = tpu.matmul %177, %172, %cst_35 {dimension_numbers = #tpu.dot_dimension_numbers<[1], [0], [0], [1], [0, 0, 1, 1], [], []>} : vector<2x32xf32>, vector<32x128xf32>, vector<2x128xf32> -> vector<2x128xf32>
    %181 = arith.addf %179, %180 : vector<2x128xf32>
    %182 = arith.negf %181 : vector<2x128xf32>
    %183 = math.exp %182 : vector<2x128xf32>
    %cst_36 = arith.constant 1.000000e+00 : f32
    %184 = vector.broadcast %cst_36 : f32 to vector<2x128xf32>
    %185 = arith.addf %184, %183 : vector<2x128xf32>
    %186 = arith.divf %184, %185 : vector<2x128xf32>
    %187 = math.tanh %181 : vector<2x128xf32>
    %188 = vector.extract_strided_slice %186 {offsets = [0, 0], sizes = [2, 32], strides = [1, 1]} : vector<2x128xf32> to vector<2x32xf32>
    %189 = vector.extract_strided_slice %186 {offsets = [0, 32], sizes = [2, 32], strides = [1, 1]} : vector<2x128xf32> to vector<2x32xf32>
    %190 = vector.extract_strided_slice %187 {offsets = [0, 64], sizes = [2, 32], strides = [1, 1]} : vector<2x128xf32> to vector<2x32xf32>
    %191 = vector.extract_strided_slice %186 {offsets = [0, 96], sizes = [2, 32], strides = [1, 1]} : vector<2x128xf32> to vector<2x32xf32>
    %192 = arith.mulf %189, %178 : vector<2x32xf32>
    %193 = arith.mulf %188, %190 : vector<2x32xf32>
    %194 = arith.addf %192, %193 : vector<2x32xf32>
    %195 = math.tanh %194 : vector<2x32xf32>
    %196 = arith.mulf %191, %195 : vector<2x32xf32>
    %197 = vector.extract_strided_slice %176 {offsets = [2, 0], sizes = [2, 128], strides = [1, 1]} : vector<16x128xf32> to vector<2x128xf32>
    %cst_37 = arith.constant dense<0.000000e+00> : vector<2x128xf32>
    %198 = tpu.matmul %196, %172, %cst_37 {dimension_numbers = #tpu.dot_dimension_numbers<[1], [0], [0], [1], [0, 0, 1, 1], [], []>} : vector<2x32xf32>, vector<32x128xf32>, vector<2x128xf32> -> vector<2x128xf32>
    %199 = arith.addf %197, %198 : vector<2x128xf32>
    %200 = arith.negf %199 : vector<2x128xf32>
    %201 = math.exp %200 : vector<2x128xf32>
    %cst_38 = arith.constant 1.000000e+00 : f32
    %202 = vector.broadcast %cst_38 : f32 to vector<2x128xf32>
    %203 = arith.addf %202, %201 : vector<2x128xf32>
    %204 = arith.divf %202, %203 : vector<2x128xf32>
    %205 = math.tanh %199 : vector<2x128xf32>
    %206 = vector.extract_strided_slice %204 {offsets = [0, 0], sizes = [2, 32], strides = [1, 1]} : vector<2x128xf32> to vector<2x32xf32>
    %207 = vector.extract_strided_slice %204 {offsets = [0, 32], sizes = [2, 32], strides = [1, 1]} : vector<2x128xf32> to vector<2x32xf32>
    %208 = vector.extract_strided_slice %205 {offsets = [0, 64], sizes = [2, 32], strides = [1, 1]} : vector<2x128xf32> to vector<2x32xf32>
    %209 = vector.extract_strided_slice %204 {offsets = [0, 96], sizes = [2, 32], strides = [1, 1]} : vector<2x128xf32> to vector<2x32xf32>
    %210 = arith.mulf %207, %194 : vector<2x32xf32>
    %211 = arith.mulf %206, %208 : vector<2x32xf32>
    %212 = arith.addf %210, %211 : vector<2x32xf32>
    %213 = math.tanh %212 : vector<2x32xf32>
    %214 = arith.mulf %209, %213 : vector<2x32xf32>
    %215 = vector.extract_strided_slice %176 {offsets = [4, 0], sizes = [2, 128], strides = [1, 1]} : vector<16x128xf32> to vector<2x128xf32>
    %cst_39 = arith.constant dense<0.000000e+00> : vector<2x128xf32>
    %216 = tpu.matmul %214, %172, %cst_39 {dimension_numbers = #tpu.dot_dimension_numbers<[1], [0], [0], [1], [0, 0, 1, 1], [], []>} : vector<2x32xf32>, vector<32x128xf32>, vector<2x128xf32> -> vector<2x128xf32>
    %217 = arith.addf %215, %216 : vector<2x128xf32>
    %218 = arith.negf %217 : vector<2x128xf32>
    %219 = math.exp %218 : vector<2x128xf32>
    %cst_40 = arith.constant 1.000000e+00 : f32
    %220 = vector.broadcast %cst_40 : f32 to vector<2x128xf32>
    %221 = arith.addf %220, %219 : vector<2x128xf32>
    %222 = arith.divf %220, %221 : vector<2x128xf32>
    %223 = math.tanh %217 : vector<2x128xf32>
    %224 = vector.extract_strided_slice %222 {offsets = [0, 0], sizes = [2, 32], strides = [1, 1]} : vector<2x128xf32> to vector<2x32xf32>
    %225 = vector.extract_strided_slice %222 {offsets = [0, 32], sizes = [2, 32], strides = [1, 1]} : vector<2x128xf32> to vector<2x32xf32>
    %226 = vector.extract_strided_slice %223 {offsets = [0, 64], sizes = [2, 32], strides = [1, 1]} : vector<2x128xf32> to vector<2x32xf32>
    %227 = vector.extract_strided_slice %222 {offsets = [0, 96], sizes = [2, 32], strides = [1, 1]} : vector<2x128xf32> to vector<2x32xf32>
    %228 = arith.mulf %225, %212 : vector<2x32xf32>
    %229 = arith.mulf %224, %226 : vector<2x32xf32>
    %230 = arith.addf %228, %229 : vector<2x32xf32>
    %231 = math.tanh %230 : vector<2x32xf32>
    %232 = arith.mulf %227, %231 : vector<2x32xf32>
    %233 = vector.extract_strided_slice %176 {offsets = [6, 0], sizes = [2, 128], strides = [1, 1]} : vector<16x128xf32> to vector<2x128xf32>
    %cst_41 = arith.constant dense<0.000000e+00> : vector<2x128xf32>
    %234 = tpu.matmul %232, %172, %cst_41 {dimension_numbers = #tpu.dot_dimension_numbers<[1], [0], [0], [1], [0, 0, 1, 1], [], []>} : vector<2x32xf32>, vector<32x128xf32>, vector<2x128xf32> -> vector<2x128xf32>
    %235 = arith.addf %233, %234 : vector<2x128xf32>
    %236 = arith.negf %235 : vector<2x128xf32>
    %237 = math.exp %236 : vector<2x128xf32>
    %cst_42 = arith.constant 1.000000e+00 : f32
    %238 = vector.broadcast %cst_42 : f32 to vector<2x128xf32>
    %239 = arith.addf %238, %237 : vector<2x128xf32>
    %240 = arith.divf %238, %239 : vector<2x128xf32>
    %241 = math.tanh %235 : vector<2x128xf32>
    %242 = vector.extract_strided_slice %240 {offsets = [0, 0], sizes = [2, 32], strides = [1, 1]} : vector<2x128xf32> to vector<2x32xf32>
    %243 = vector.extract_strided_slice %240 {offsets = [0, 32], sizes = [2, 32], strides = [1, 1]} : vector<2x128xf32> to vector<2x32xf32>
    %244 = vector.extract_strided_slice %241 {offsets = [0, 64], sizes = [2, 32], strides = [1, 1]} : vector<2x128xf32> to vector<2x32xf32>
    %245 = vector.extract_strided_slice %240 {offsets = [0, 96], sizes = [2, 32], strides = [1, 1]} : vector<2x128xf32> to vector<2x32xf32>
    %246 = arith.mulf %243, %230 : vector<2x32xf32>
    %247 = arith.mulf %242, %244 : vector<2x32xf32>
    %248 = arith.addf %246, %247 : vector<2x32xf32>
    %249 = math.tanh %248 : vector<2x32xf32>
    %250 = arith.mulf %245, %249 : vector<2x32xf32>
    %251 = vector.extract_strided_slice %176 {offsets = [8, 0], sizes = [2, 128], strides = [1, 1]} : vector<16x128xf32> to vector<2x128xf32>
    %cst_43 = arith.constant dense<0.000000e+00> : vector<2x128xf32>
    %252 = tpu.matmul %250, %172, %cst_43 {dimension_numbers = #tpu.dot_dimension_numbers<[1], [0], [0], [1], [0, 0, 1, 1], [], []>} : vector<2x32xf32>, vector<32x128xf32>, vector<2x128xf32> -> vector<2x128xf32>
    %253 = arith.addf %251, %252 : vector<2x128xf32>
    %254 = arith.negf %253 : vector<2x128xf32>
    %255 = math.exp %254 : vector<2x128xf32>
    %cst_44 = arith.constant 1.000000e+00 : f32
    %256 = vector.broadcast %cst_44 : f32 to vector<2x128xf32>
    %257 = arith.addf %256, %255 : vector<2x128xf32>
    %258 = arith.divf %256, %257 : vector<2x128xf32>
    %259 = math.tanh %253 : vector<2x128xf32>
    %260 = vector.extract_strided_slice %258 {offsets = [0, 0], sizes = [2, 32], strides = [1, 1]} : vector<2x128xf32> to vector<2x32xf32>
    %261 = vector.extract_strided_slice %258 {offsets = [0, 32], sizes = [2, 32], strides = [1, 1]} : vector<2x128xf32> to vector<2x32xf32>
    %262 = vector.extract_strided_slice %259 {offsets = [0, 64], sizes = [2, 32], strides = [1, 1]} : vector<2x128xf32> to vector<2x32xf32>
    %263 = vector.extract_strided_slice %258 {offsets = [0, 96], sizes = [2, 32], strides = [1, 1]} : vector<2x128xf32> to vector<2x32xf32>
    %264 = arith.mulf %261, %248 : vector<2x32xf32>
    %265 = arith.mulf %260, %262 : vector<2x32xf32>
    %266 = arith.addf %264, %265 : vector<2x32xf32>
    %267 = math.tanh %266 : vector<2x32xf32>
    %268 = arith.mulf %263, %267 : vector<2x32xf32>
    %269 = vector.extract_strided_slice %176 {offsets = [10, 0], sizes = [2, 128], strides = [1, 1]} : vector<16x128xf32> to vector<2x128xf32>
    %cst_45 = arith.constant dense<0.000000e+00> : vector<2x128xf32>
    %270 = tpu.matmul %268, %172, %cst_45 {dimension_numbers = #tpu.dot_dimension_numbers<[1], [0], [0], [1], [0, 0, 1, 1], [], []>} : vector<2x32xf32>, vector<32x128xf32>, vector<2x128xf32> -> vector<2x128xf32>
    %271 = arith.addf %269, %270 : vector<2x128xf32>
    %272 = arith.negf %271 : vector<2x128xf32>
    %273 = math.exp %272 : vector<2x128xf32>
    %cst_46 = arith.constant 1.000000e+00 : f32
    %274 = vector.broadcast %cst_46 : f32 to vector<2x128xf32>
    %275 = arith.addf %274, %273 : vector<2x128xf32>
    %276 = arith.divf %274, %275 : vector<2x128xf32>
    %277 = math.tanh %271 : vector<2x128xf32>
    %278 = vector.extract_strided_slice %276 {offsets = [0, 0], sizes = [2, 32], strides = [1, 1]} : vector<2x128xf32> to vector<2x32xf32>
    %279 = vector.extract_strided_slice %276 {offsets = [0, 32], sizes = [2, 32], strides = [1, 1]} : vector<2x128xf32> to vector<2x32xf32>
    %280 = vector.extract_strided_slice %277 {offsets = [0, 64], sizes = [2, 32], strides = [1, 1]} : vector<2x128xf32> to vector<2x32xf32>
    %281 = vector.extract_strided_slice %276 {offsets = [0, 96], sizes = [2, 32], strides = [1, 1]} : vector<2x128xf32> to vector<2x32xf32>
    %282 = arith.mulf %279, %266 : vector<2x32xf32>
    %283 = arith.mulf %278, %280 : vector<2x32xf32>
    %284 = arith.addf %282, %283 : vector<2x32xf32>
    %285 = math.tanh %284 : vector<2x32xf32>
    %286 = arith.mulf %281, %285 : vector<2x32xf32>
    %287 = vector.extract_strided_slice %176 {offsets = [12, 0], sizes = [2, 128], strides = [1, 1]} : vector<16x128xf32> to vector<2x128xf32>
    %cst_47 = arith.constant dense<0.000000e+00> : vector<2x128xf32>
    %288 = tpu.matmul %286, %172, %cst_47 {dimension_numbers = #tpu.dot_dimension_numbers<[1], [0], [0], [1], [0, 0, 1, 1], [], []>} : vector<2x32xf32>, vector<32x128xf32>, vector<2x128xf32> -> vector<2x128xf32>
    %289 = arith.addf %287, %288 : vector<2x128xf32>
    %290 = arith.negf %289 : vector<2x128xf32>
    %291 = math.exp %290 : vector<2x128xf32>
    %cst_48 = arith.constant 1.000000e+00 : f32
    %292 = vector.broadcast %cst_48 : f32 to vector<2x128xf32>
    %293 = arith.addf %292, %291 : vector<2x128xf32>
    %294 = arith.divf %292, %293 : vector<2x128xf32>
    %295 = math.tanh %289 : vector<2x128xf32>
    %296 = vector.extract_strided_slice %294 {offsets = [0, 0], sizes = [2, 32], strides = [1, 1]} : vector<2x128xf32> to vector<2x32xf32>
    %297 = vector.extract_strided_slice %294 {offsets = [0, 32], sizes = [2, 32], strides = [1, 1]} : vector<2x128xf32> to vector<2x32xf32>
    %298 = vector.extract_strided_slice %295 {offsets = [0, 64], sizes = [2, 32], strides = [1, 1]} : vector<2x128xf32> to vector<2x32xf32>
    %299 = vector.extract_strided_slice %294 {offsets = [0, 96], sizes = [2, 32], strides = [1, 1]} : vector<2x128xf32> to vector<2x32xf32>
    %300 = arith.mulf %297, %284 : vector<2x32xf32>
    %301 = arith.mulf %296, %298 : vector<2x32xf32>
    %302 = arith.addf %300, %301 : vector<2x32xf32>
    %303 = math.tanh %302 : vector<2x32xf32>
    %304 = arith.mulf %299, %303 : vector<2x32xf32>
    %305 = vector.extract_strided_slice %176 {offsets = [14, 0], sizes = [2, 128], strides = [1, 1]} : vector<16x128xf32> to vector<2x128xf32>
    %cst_49 = arith.constant dense<0.000000e+00> : vector<2x128xf32>
    %306 = tpu.matmul %304, %172, %cst_49 {dimension_numbers = #tpu.dot_dimension_numbers<[1], [0], [0], [1], [0, 0, 1, 1], [], []>} : vector<2x32xf32>, vector<32x128xf32>, vector<2x128xf32> -> vector<2x128xf32>
    %307 = arith.addf %305, %306 : vector<2x128xf32>
    %308 = arith.negf %307 : vector<2x128xf32>
    %309 = math.exp %308 : vector<2x128xf32>
    %cst_50 = arith.constant 1.000000e+00 : f32
    %310 = vector.broadcast %cst_50 : f32 to vector<2x128xf32>
    %311 = arith.addf %310, %309 : vector<2x128xf32>
    %312 = arith.divf %310, %311 : vector<2x128xf32>
    %313 = math.tanh %307 : vector<2x128xf32>
    %314 = vector.extract_strided_slice %312 {offsets = [0, 0], sizes = [2, 32], strides = [1, 1]} : vector<2x128xf32> to vector<2x32xf32>
    %315 = vector.extract_strided_slice %312 {offsets = [0, 32], sizes = [2, 32], strides = [1, 1]} : vector<2x128xf32> to vector<2x32xf32>
    %316 = vector.extract_strided_slice %313 {offsets = [0, 64], sizes = [2, 32], strides = [1, 1]} : vector<2x128xf32> to vector<2x32xf32>
    %317 = vector.extract_strided_slice %312 {offsets = [0, 96], sizes = [2, 32], strides = [1, 1]} : vector<2x128xf32> to vector<2x32xf32>
    %318 = arith.mulf %315, %302 : vector<2x32xf32>
    %319 = arith.mulf %314, %316 : vector<2x32xf32>
    %320 = arith.addf %318, %319 : vector<2x32xf32>
    %321 = math.tanh %320 : vector<2x32xf32>
    %322 = arith.mulf %317, %321 : vector<2x32xf32>
    %c0_51 = arith.constant 0 : index
    %c0_52 = arith.constant 0 : index
    %323 = vector.load %arg7[%c0_51, %c0_52] : memref<1x32xf32, #tpu.memory_space<vmem>>, vector<1x32xf32>
    %324 = vector.broadcast %323 : vector<1x32xf32> to vector<2x32xf32>
    %325 = arith.mulf %322, %324 : vector<2x32xf32>
    %cst_53 = arith.constant dense<0.000000e+00> : vector<2xf32>
    %326 = vector.multi_reduction <add>, %325, %cst_53 [1] : vector<2x32xf32> to vector<2xf32>
    %327 = vector.shape_cast %326 : vector<2xf32> to vector<2x1xf32>
    %c0_54 = arith.constant 0 : index
    %c0_55 = arith.constant 0 : index
    %328 = vector.load %arg8[%c0_54, %c0_55] : memref<1x1xf32, #tpu.memory_space<vmem>>, vector<1x1xf32>
    %329 = vector.broadcast %328 : vector<1x1xf32> to vector<2x1xf32>
    %330 = arith.addf %327, %329 : vector<2x1xf32>
    %331 = arith.negf %330 : vector<2x1xf32>
    %332 = math.exp %331 : vector<2x1xf32>
    %cst_56 = arith.constant 1.000000e+00 : f32
    %333 = vector.broadcast %cst_56 : f32 to vector<2x1xf32>
    %334 = arith.addf %333, %332 : vector<2x1xf32>
    %335 = arith.divf %333, %334 : vector<2x1xf32>
    %c0_57 = arith.constant 0 : index
    %c0_58 = arith.constant 0 : index
    %336 = vector.load %arg9[%c0_57, %c0_58] : memref<2x1xf32, #tpu.memory_space<vmem>>, vector<2x1xf32>
    tpu.vector_store %arg9[%c0_57, %c0_58], %335 {strides = array<i32>} : memref<2x1xf32, #tpu.memory_space<vmem>>, vector<2x1xf32>,
    return
  }
}

</mosaic_0001>

<bundles_post_ra>
// kernel: lstm_binary_classifier_forward.1
= control target key start
LH: loop header
LB: loop body
LE: loop exit
PB: predicated region body
PF: predicated region fallthrough
CT: control target
= control target key end

     0   :  { %s3176_s0 = inlined_call_operand.hbm [shape: f32[2,8,16], index: 0, kind: input, shape index: {}]   ;;  %s3177_s1 = inlined_call_operand.hbm [shape: f32[16,128], index: 1, kind: input, shape index: {}]   ;;  %s3178_s2 = inlined_call_operand.hbm [shape: f32[32,128], index: 2, kind: input, shape index: {}]   ;;  %s3179_s3 = inlined_call_operand.vmem [shape: f32[1,128], index: 3, kind: input, shape index: {}]   ;;  %s3180_s4 = inlined_call_operand.hbm [shape: f32[32,128], index: 4, kind: input, shape index: {}]   ;;  %s3181_s5 = inlined_call_operand.hbm [shape: f32[32,128], index: 5, kind: input, shape index: {}]   ;;  %s3182_s6 = inlined_call_operand.vmem [shape: f32[1,128], index: 6, kind: input, shape index: {}]   ;;  %s3183_s7 = inlined_call_operand.vmem [shape: f32[1,32], index: 7, kind: input, shape index: {}]   ;;  %s3184_s8 = inlined_call_operand.<no memory space> [shape: f32[1,1], index: 8, kind: input, shape index: {}]   ;;  %s3185_s9 = inlined_call_operand.vmem [shape: f32[2,1], index: 9, kind: output, shape index: {}]  }
   0x1   :  { %v14_v0 = vstv %s3184_s8 }
   0x2   :  { %15 = vst [vmem:[#allocation2] sm:$0x1] %v14_v0 }
   0x3   :  { %16 = vsyncpa [#allocation4], 0 }
   0x4   :  { %17 = vsyncpa [#allocation6], 0 }
   0x5   :  { %18 = vsyncpa [#allocation9], 0  ;;  %s2765_s11 = smov [#allocation5]   ;;  %s2766_s13 = smov [#allocation8]  }
   0x6   :  { %s36_s12 = sshll.u32 %s2765_s11, 4  ;;  %s62_s14 = sshll.u32 %s2766_s13, 4  ;;  %s37_s12 = int_to_ptr.vmem [resolvable:$true] %s36_s12  ;;  %s2831_s14 = int_to_ptr.vmem [resolvable:$true] %s62_s14 }
   0x7   :  { %s2649_s17 = scalar_lea.hbm %s3177_s1, 256 }
   0x8   :  { %p2650_p0 = scmp.ne.s32.totalorder %s3177_s1, %s2649_s17  ;;  %p2653_p1 = scmp.lt.u32.totalorder %s2649_s17, %s3177_s1 }
   0xa   :  { %p2655_p2 = pnand %p2653_p1, %p2650_p0 }
   0xc   :  { %2658 = shalt.err (!%p2655_p2)
}
   0xd   :  { %s2659_s21 = scalar_lea.vmem %s37_s12, 256  ;;  %p2664_p4 = scmp.lt.s32.totalorder %s37_s12, %s37_s12 }
   0xe   :  { %p2660_p3 = scmp.ne.s32.totalorder %s37_s12, %s2659_s21  ;;  %p2665_p5 = scmp.lt.s32.totalorder %s2659_s21, %s2659_s21 }
  0x10   :  { %p2666_p6 = por %p2665_p5, %p2664_p4 }
  0x12   :  { %p2667_p7 = pnand %p2666_p6, %p2660_p3 }
  0x14   :  { %2670 = shalt.err (!%p2667_p7)
}
  0x15   :  { %s2767_s22 = smov 128   ;;  %s2768_s23 = smov 8  }
  0x16   :  { %42 = dma.hbm_to_vmem [thread:$0]  %s3177_s1, 256, %s37_s12, [#allocation6], %s2767_s22, %s2767_s22, %s2768_s23  }
  0x17   :  { %s2671_s28 = scalar_lea.hbm %s3180_s4, 512 }
  0x18   :  { %p2672_p8 = scmp.ne.s32.totalorder %s3180_s4, %s2671_s28  ;;  %p2675_p9 = scmp.lt.u32.totalorder %s2671_s28, %s3180_s4 }
  0x1a   :  { %p2677_p10 = pnand %p2675_p9, %p2672_p8 }
  0x1c   :  { %2680 = shalt.err (!%p2677_p10)
}
  0x1d   :  { %s2681_s13 = scalar_lea.vmem %s2831_s14, 512  ;;  %p2686_p12 = scmp.lt.s32.totalorder %s2831_s14, %s2831_s14 }
  0x1e   :  { %p2682_p11 = scmp.ne.s32.totalorder %s2831_s14, %s2681_s13  ;;  %p2687_p13 = scmp.lt.s32.totalorder %s2681_s13, %s2681_s13 }
  0x20   :  { %p2688_p0 = por %p2687_p13, %p2686_p12 }
  0x22   :  { %p2689_p1 = pnand %p2688_p0, %p2682_p11 }
  0x24   :  { %2692 = shalt.err (!%p2689_p1)
}
  0x25   :  { %68 = dma.hbm_to_vmem [thread:$0]  %s3180_s4, 512, %s2831_s14, [#allocation9], %s2767_s22, %s2767_s22, %s2768_s23  }
  0x26   :  { %s2769_s15 = smov [#allocation3]   ;;  %s2770_s17 = smov [#allocation7]  }
  0x27   :  { %s24_s16 = sshll.u32 %s2769_s15, 4  ;;  %s48_s18 = sshll.u32 %s2770_s17, 4  ;;  %s25_s16 = int_to_ptr.vmem [resolvable:$true] %s24_s16  ;;  %s2868_s18 = int_to_ptr.vmem [resolvable:$true] %s48_s18 }
  0x28   :  { %s2693_s20 = scalar_lea.hbm %s3176_s0, 256 }
  0x29   :  { %p2694_p2 = scmp.ne.s32.totalorder %s3176_s0, %s2693_s20  ;;  %p2697_p3 = scmp.lt.u32.totalorder %s2693_s20, %s3176_s0 }
  0x2b   :  { %p2699_p4 = pnand %p2697_p3, %p2694_p2 }
  0x2d   :  { %2702 = shalt.err (!%p2699_p4)
}
  0x2e   :  { %s2703_s4 = scalar_lea.vmem %s25_s16, 256  ;;  %p2708_p6 = scmp.lt.s32.totalorder %s25_s16, %s25_s16 }
  0x2f   :  { %p2704_p5 = scmp.ne.s32.totalorder %s25_s16, %s2703_s4  ;;  %p2709_p7 = scmp.lt.s32.totalorder %s2703_s4, %s2703_s4 }
  0x31   :  { %p2710_p8 = por %p2709_p7, %p2708_p6 }
  0x33   :  { %p2711_p9 = pnand %p2710_p8, %p2704_p5 }
  0x35   :  { %2714 = shalt.err (!%p2711_p9)
}
  0x36   :  { %30 = dma.hbm_to_vmem [thread:$0]  %s3176_s0, 256, %s25_s16, [#allocation4], %s2767_s22, %s2767_s22, %s2768_s23  }
  0x37   :  { %s2715_s30 = scalar_lea.hbm %s3178_s2, 512 }
  0x38   :  { %p2716_p10 = scmp.ne.s32.totalorder %s3178_s2, %s2715_s30  ;;  %p2719_p11 = scmp.lt.u32.totalorder %s2715_s30, %s3178_s2 }
  0x3a   :  { %p2721_p12 = pnand %p2719_p11, %p2716_p10 }
  0x3c   :  { %2724 = shalt.err (!%p2721_p12)
}
  0x3d   :  { %s2725_s12 = scalar_lea.vmem %s2868_s18, 512  ;;  %p2730_p0 = scmp.lt.s32.totalorder %s2868_s18, %s2868_s18 }
  0x3e   :  { %p2726_p13 = scmp.ne.s32.totalorder %s2868_s18, %s2725_s12  ;;  %p2731_p1 = scmp.lt.s32.totalorder %s2725_s12, %s2725_s12 }
  0x40   :  { %p2732_p2 = por %p2731_p1, %p2730_p0 }
  0x42   :  { %p2733_p3 = pnand %p2732_p2, %p2726_p13 }
  0x44   :  { %2736 = shalt.err (!%p2733_p3)
}
  0x45   :  { %54 = dma.hbm_to_vmem [thread:$0]  %s3178_s2, 512, %s2868_s18, [#allocation6], %s2767_s22, %s2767_s22, %s2768_s23  }
  0x46   :  { %s2771_s16 = smov [#allocation10]   ;;  %s2737_s20 = scalar_lea.hbm %s3181_s5, 512 }
  0x47   :  { %s74_s17 = sshll.u32 %s2771_s16, 4  ;;  %p2738_p4 = scmp.ne.s32.totalorder %s3181_s5, %s2737_s20  ;;  %s75_s17 = int_to_ptr.vmem [resolvable:$true] %s74_s17 }
  0x48   :  { %p2741_p5 = scmp.lt.u32.totalorder %s2737_s20, %s3181_s5 }
  0x4a   :  { %p2743_p6 = pnand %p2741_p5, %p2738_p4 }
  0x4c   :  { %2746 = shalt.err (!%p2743_p6)
}
  0x4d   :  { %s2747_s4 = scalar_lea.vmem %s75_s17, 512  ;;  %p2752_p8 = scmp.lt.s32.totalorder %s75_s17, %s75_s17 }
  0x4e   :  { %p2748_p7 = scmp.ne.s32.totalorder %s75_s17, %s2747_s4  ;;  %p2753_p9 = scmp.lt.s32.totalorder %s2747_s4, %s2747_s4 }
  0x50   :  { %p2754_p10 = por %p2753_p9, %p2752_p8 }
  0x52   :  { %p2755_p11 = pnand %p2754_p10, %p2748_p7 }
  0x54   :  { %2758 = shalt.err (!%p2755_p11)
}
  0x55   :  { %80 = dma.hbm_to_vmem [thread:$0]  %s3181_s5, 512, %s75_s17, [#allocation9], %s2767_s22, %s2767_s22, %s2768_s23  }
  0x56   :  { %2759 = dma.done.wait [#allocation4], 256  }
  0x57   :  { %2760 = vsyncadd [#allocation4], 4294967040 }
  0x58   :  { %2761 = dma.done.wait [#allocation6], 768  }
  0x59   :  { %2762 = vsyncadd [#allocation6], 4294966528 }
  0x5a   :  { %2763 = dma.done.wait [#allocation9], 1024  }
  0x5b   :  { %2764 = vsyncadd [#allocation9], 4294966272  ;;  %v2772_v1 = vmov 0.0|0.0   ;;  %vm2773_vm0 = vmmov 0   ;;  %v2774_v2 = vmov 0.0   ;;  %vm107_vm1 = vcmask 1041409  }
  0x5c   :  { %2400 = vmatprep.subr.bf16.mxu1 %v2772_v1  ;;  %2217 = vmatprep.mubr.msk.f32.mxu1 %vm2773_vm0, %v2774_v2  ;;  %vm112_vm2 = vcmask 1043459   ;;  %v151_v3 = vld [vmem:[#allocation7] sm:$0xff]  ;;  %v152_v4 = vld [vmem:[#allocation7 + $0x8] sm:$0xff]  ;;  %v149_v5 = vld [vmem:[#allocation5] sm:$0xff]  ;;  %vm117_vm3 = vcmask 1045509   ;;  %vm122_vm4 = vcmask 1047559  }
  0x5d   :  { %vm140_vm5 = vcmask 1041408   ;;  %v2923_v6 = vpack.c.bf16 %v152_v4, %v151_v3  ;;  %v150_v7 = vld [vmem:[#allocation5 + $0x8] sm:$0xff]  ;;  %v102_v8 = vld [vmem:[#allocation3] sm:$0xff]  ;;  %v103_v9 = vld [vmem:[#allocation3 + $0x8] sm:$0xff]  ;;  %vm142_vm6 = vcmask 1043456   ;;  %vm144_vm7 = vcmask 1045504  }
  0x5e   :  { %vm162_vm8 = vcmask 130048   ;;  %v2396_v10 = vpack.c.bf16 %v150_v7, %v149_v5  ;;  %v106_v11 = vrot.slane %v103_v9, 7  ;;  %v110_v12 = vrot.slane %v102_v8, 7  ;;  %v153_v14 = vld [vmem:[#allocation7 + $0x10] sm:$0xff]  ;;  %v154_v15 = vld [vmem:[#allocation7 + $0x18] sm:$0xff]  ;;  %s2775_s23 = smov 64  }
  0x5f   :  { %v111_v13 = vrot.slane %v103_v9, 6  ;;  %2402 = vmatpush3.bf16.msra.mxu1 %v2923_v6  ;;  %v115_v16 = vrot.slane %v102_v8, 6  ;;  %v116_v17 = vrot.slane %v103_v9, 5  ;;  %v120_v18 = vrot.slane %v102_v8, 5  ;;  %v2073_v42 = vld [vmem:[%s3179_s3] ss:$0 sm:$0xff] }
  0x60   :  { %v121_v19 = vrot.slane %v103_v9, 4  ;;  %2397 = vmatprep.subr.bf16.mxu0 %v2396_v10  ;;  %2403 = vmatprep.subr.bf16.mxu1 %v2772_v1  ;;  %v108_v20 = vsel %vm107_vm1, %v106_v11, %v102_v8  ;;  %v2929_v22 = vpack.c.bf16 %v154_v15, %v153_v14  ;;  %v125_v23 = vrot.slane %v102_v8, 4  ;;  %s2776_s3 = smov 32   ;;  %s2777_s29 = smov 96  }
  0x61   :  { %v113_v21 = vsel %vm112_vm2, %v111_v13, %v110_v12  ;;  %2399 = vmatpush3.bf16.msra.mxu0 %v2396_v10  ;;  %v118_v24 = vsel %vm117_vm3, %v116_v17, %v115_v16  ;;  %v126_v27 = vrot.slane %v103_v9, 3  ;;  %v129_v29 = vrot.slane %v102_v8, 3 }
  0x62   :  { %v123_v25 = vsel %vm122_vm4, %v121_v19, %v120_v18  ;;  %v141_v26 = vsel %vm140_vm5, %v108_v20, %v113_v21  ;;  %v130_v30 = vrot.slane %v103_v9, 2  ;;  %v133_v31 = vrot.slane %v102_v8, 2  ;;  %2406 = vmatprep.subr.bf16.mxu0 %v2772_v1 }
  0x63   :  { %v143_v28 = vsel %vm142_vm6, %v141_v26, %v118_v24  ;;  %2405 = vmatpush3.bf16.msra.mxu1 %v2929_v22  ;;  %v127_v33 = vsel %vm107_vm1, %v126_v27, %v125_v23  ;;  %v134_v34 = vrot.slane %v103_v9, 1  ;;  %v137_v35 = vrot.slane %v102_v8, 1 }
  0x64   :  { %v145_v32 = vsel %vm144_vm7, %v143_v28, %v123_v25  ;;  %v131_v36 = vsel %vm112_vm2, %v130_v30, %v129_v29  ;;  %2412 = vmatprep.subr.bf16.mxu1 %v2772_v1  ;;  %vm244_vm9 = vcmask 261120   ;;  %vm2046_vm10 = vcmask 261126  }
  0x65   :  { %2206 = vmatprep.mubr.msk.f32.mxu0 %vm162_vm8, %v145_v32  ;;  %v135_v37 = vsel %vm117_vm3, %v134_v34, %v133_v31  ;;  %v138_v38 = vsel %vm122_vm4, %v103_v9, %v137_v35  ;;  %v146_v39 = vsel %vm140_vm5, %v127_v33, %v131_v36  ;;  %vm2064_vm11 = vcmask 7174  }
  0x66   :  { %v147_v40 = vsel %vm142_vm6, %v146_v39, %v135_v37  ;;  %2218 = vmatmul.mubr.f32.vlgmr.msra.gmra.mrb[0].mxu1 %v2774_v2 }
  0x67   :  { %v148_v41 = vsel %vm144_vm7, %v147_v40, %v138_v38  ;;  %2414 = vmatpush3.bf16.msra.mxu1 %v2923_v6  ;;  %2239 = vmatprep.mubr.msk.f32.mxu1 %vm2773_vm0, %v2774_v2 }
  0x68   :  { %2207 = vmatmul.mubr.msk.f32.vlgmr.msra.gmra.mrb[0].mxu0 %vm162_vm8, %v148_v41  ;;  %2415 = vmatprep.subr.bf16.mxu1 %v2772_v1 }
  0x69   :  { %2408 = vmatpush3.bf16.msra.mxu0 %v2923_v6  ;;  %2228 = vmatprep.mubr.msk.f32.mxu0 %vm2773_vm0, %v2774_v2 }
  0x6a   :  { %2409 = vmatprep.subr.bf16.mxu0 %v2772_v1 }
  0x6b   :  { %2417 = vmatpush3.bf16.msra.mxu1 %v2929_v22 }
  0x6c   :  { %2424 = vmatprep.subr.bf16.mxu1 %v2772_v1 }
  0x6d   :  { %2411 = vmatpush3.bf16.msra.mxu0 %v2929_v22 }
  0x6e   :  { %2418 = vmatprep.subr.bf16.mxu0 %v2772_v1 }
 0x139   :  { %v314_v43 = vpop.f32.mrb[0].mxu1 }
 0x13a   :  { %v2219_v44 = vpop.f32.mrb[1].mxu1 }
 0x13b   :  { %v2208_v45 = vpop.f32.mrb[0].mxu0 }
 0x13c   :  { %v2964_v46 = vadd.f32 %v2208_v45, %v2073_v42  ;;  %v235_v47 = vpop.f32.mrb[1].mxu0 }
 0x13d   :  { %v2966_v48 = vadd.f32 %v2073_v42, %v235_v47 }
 0x13f   :  { %v318_v49 = vadd.f32 %v314_v43, %v2966_v48 }
 0x141   :  { %2517 = vtanh.f32 %v318_v49  ;;  %v2076_v51 = vmul.f32 -1.442695, %v318_v49 }
 0x143   :  { %2519 = vpow2.f32 %v2076_v51 }
 0x14b   :  { %v2518_v50 = vpop.eup %2517 }
 0x14c   :  { %328 = vrot.lane.b32.xlu0 %v2518_v50, %s2775_s23 }
 0x14d   :  { %v2520_v52 = vpop.eup %2519 }
 0x14e   :  { %v322_v53 = vadd.f32 1.0, %v2520_v52 }
 0x150   :  { %2521 = vrcp.f32 %v322_v53 }
 0x15a   :  { %v2522_v54 = vpop.eup %2521 }
 0x15b   :  { %v326_v57 = vmul.f32 0.0, %v2522_v54 }
 0x1be   :  { %v329_v55 = vpop.permute.xlu0 %328 }
 0x1bf   :  { %v331_v56 = vmul.f32 %v2522_v54, %v329_v55 }
 0x1c1   :  { %333 = vrot.lane.b32.xlu0 %v331_v56, %s2776_s3 }
 0x233   :  { %v334_v58 = vpop.permute.xlu0 %333 }
 0x234   :  { %v336_v59 = vadd.f32 %v334_v58, %v326_v57 }
 0x236   :  { %2523 = vtanh.f32 %v336_v59  ;;  %v430_v14 = vrot.slane %v336_v59, 6 }
 0x240   :  { %v2524_v60 = vpop.eup %2523 }
 0x241   :  { %339 = vrot.lane.b32.xlu1 %v2524_v60, %s2775_s23 }
 0x2b3   :  { %v340_v61 = vpop.permute.xlu1 %339 }
 0x2b4   :  { %v2972_v62 = vmul.f32 %v2522_v54, %v340_v61 }
 0x2b6   :  { %344 = vrot.lane.b32.xlu1 %v2972_v62, %s2776_s3 }
 0x328   :  { %v345_v63 = vpop.permute.xlu1 %344 }
 0x329   :  { %2229 = vmatmul.mubr.msk.f32.vlgmr.msra.gmra.mrb[2].mxu0 %vm244_vm9, %v345_v63 }
 0x32a   :  { %2420 = vmatpush3.bf16.msra.mxu0 %v2923_v6  ;;  %2250 = vmatprep.mubr.msk.f32.mxu0 %vm2773_vm0, %v2774_v2 }
 0x32b   :  { %2421 = vmatprep.subr.bf16.mxu0 %v2772_v1 }
 0x32e   :  { %2423 = vmatpush3.bf16.msra.mxu0 %v2929_v22 }
 0x32f   :  { %2430 = vmatprep.subr.bf16.mxu0 %v2772_v1 }
 0x3fc   :  { %v414_v0 = vpop.f32.mrb[2].mxu0 }
 0x3fd   :  { %v419_v3 = vrot.slane %v414_v0, 6  ;;  %v2230_v4 = vpop.f32.mrb[3].mxu0 }
 0x3ff   :  { %v421_v5 = vadd.f32 %v419_v3, %v2966_v48 }
 0x401   :  { %2525 = vtanh.f32 %v421_v5  ;;  %v2078_v8 = vmul.f32 -1.442695, %v421_v5 }
 0x403   :  { %2527 = vpow2.f32 %v2078_v8 }
 0x40b   :  { %v2526_v7 = vpop.eup %2525 }
 0x40c   :  { %434 = vrot.lane.b32.xlu0 %v2526_v7, %s2775_s23 }
 0x40d   :  { %v2528_v9 = vpop.eup %2527 }
 0x40e   :  { %v425_v10 = vadd.f32 1.0, %v2528_v9 }
 0x410   :  { %2529 = vrcp.f32 %v425_v10 }
 0x41a   :  { %v2530_v11 = vpop.eup %2529 }
 0x41b   :  { %v432_v15 = vmul.f32 %v2530_v11, %v430_v14 }
 0x47e   :  { %v435_v12 = vpop.permute.xlu0 %434 }
 0x47f   :  { %v437_v13 = vmul.f32 %v2530_v11, %v435_v12 }
 0x481   :  { %439 = vrot.lane.b32.xlu1 %v437_v13, %s2776_s3 }
 0x4f3   :  { %v440_v16 = vpop.permute.xlu1 %439 }
 0x4f4   :  { %v442_v17 = vadd.f32 %v440_v16, %v432_v15 }
 0x4f6   :  { %2531 = vtanh.f32 %v442_v17  ;;  %v537_v35 = vrot.slane %v442_v17, 6 }
 0x500   :  { %v2532_v18 = vpop.eup %2531 }
 0x501   :  { %445 = vrot.lane.b32.xlu0 %v2532_v18, %s2775_s23 }
 0x573   :  { %v446_v19 = vpop.permute.xlu0 %445 }
 0x574   :  { %v448_v20 = vmul.f32 %v2530_v11, %v446_v19 }
 0x576   :  { %v450_v21 = vrot.slane %v448_v20, 2  ;;  %v1087_v42 = vsel %vm140_vm5, %v2972_v62, %v448_v20 }
 0x578   :  { %451 = vrot.lane.b32.xlu1 %v450_v21, %s2776_s3 }
 0x5ea   :  { %v452_v23 = vpop.permute.xlu1 %451 }
 0x5eb   :  { %2240 = vmatmul.mubr.msk.f32.vlgmr.msra.gmra.mrb[2].mxu1 %vm244_vm9, %v452_v23 }
 0x5ec   :  { %2426 = vmatpush3.bf16.msra.mxu1 %v2923_v6  ;;  %2261 = vmatprep.mubr.msk.f32.mxu1 %vm2773_vm0, %v2774_v2 }
 0x5ed   :  { %2427 = vmatprep.subr.bf16.mxu1 %v2772_v1 }
 0x5f0   :  { %2429 = vmatpush3.bf16.msra.mxu1 %v2929_v22 }
 0x5f1   :  { %2436 = vmatprep.subr.bf16.mxu1 %v2772_v1 }
 0x6be   :  { %v521_v24 = vpop.f32.mrb[2].mxu1 }
 0x6bf   :  { %v526_v25 = vrot.slane %v521_v24, 4  ;;  %v2241_v26 = vpop.f32.mrb[3].mxu1 }
 0x6c1   :  { %v528_v27 = vadd.f32 %v526_v25, %v2966_v48 }
 0x6c3   :  { %2533 = vtanh.f32 %v528_v27  ;;  %v2080_v29 = vmul.f32 -1.442695, %v528_v27 }
 0x6c5   :  { %2535 = vpow2.f32 %v2080_v29 }
 0x6cd   :  { %v2534_v28 = vpop.eup %2533 }
 0x6ce   :  { %541 = vrot.lane.b32.xlu0 %v2534_v28, %s2775_s23 }
 0x6cf   :  { %v2536_v30 = vpop.eup %2535 }
 0x6d0   :  { %v532_v31 = vadd.f32 1.0, %v2536_v30 }
 0x6d2   :  { %2537 = vrcp.f32 %v532_v31 }
 0x6dc   :  { %v2538_v32 = vpop.eup %2537 }
 0x6dd   :  { %v539_v36 = vmul.f32 %v2538_v32, %v537_v35 }
 0x740   :  { %v542_v33 = vpop.permute.xlu0 %541 }
 0x741   :  { %v544_v34 = vmul.f32 %v2538_v32, %v542_v33 }
 0x743   :  { %546 = vrot.lane.b32.xlu1 %v544_v34, %s2776_s3 }
 0x7b5   :  { %v547_v37 = vpop.permute.xlu1 %546 }
 0x7b6   :  { %v549_v38 = vadd.f32 %v547_v37, %v539_v36 }
 0x7b8   :  { %2539 = vtanh.f32 %v549_v38  ;;  %v644_v59 = vrot.slane %v549_v38, 6 }
 0x7c2   :  { %v2540_v39 = vpop.eup %2539 }
 0x7c3   :  { %552 = vrot.lane.b32.xlu0 %v2540_v39, %s2775_s23 }
 0x835   :  { %v553_v40 = vpop.permute.xlu0 %552 }
 0x836   :  { %v555_v41 = vmul.f32 %v2538_v32, %v553_v40 }
 0x838   :  { %v557_v43 = vrot.slane %v555_v41, 4  ;;  %v1088_v44 = vsel %vm142_vm6, %v1087_v42, %v555_v41 }
 0x83a   :  { %558 = vrot.lane.b32.xlu1 %v557_v43, %s2776_s3 }
 0x8ac   :  { %v559_v45 = vpop.permute.xlu1 %558 }
 0x8ad   :  { %2251 = vmatmul.mubr.msk.f32.vlgmr.msra.gmra.mrb[4].mxu0 %vm244_vm9, %v559_v45 }
 0x8ae   :  { %2432 = vmatpush3.bf16.msra.mxu0 %v2923_v6  ;;  %2272 = vmatprep.mubr.msk.f32.mxu0 %vm2773_vm0, %v2774_v2 }
 0x8af   :  { %2433 = vmatprep.subr.bf16.mxu0 %v2772_v1 }
 0x8b2   :  { %2435 = vmatpush3.bf16.msra.mxu0 %v2929_v22 }
 0x8b3   :  { %2442 = vmatprep.subr.bf16.mxu0 %v2772_v1 }
 0x980   :  { %v628_v47 = vpop.f32.mrb[4].mxu0 }
 0x981   :  { %v633_v49 = vrot.slane %v628_v47, 2  ;;  %v2252_v50 = vpop.f32.mrb[5].mxu0 }
 0x983   :  { %v635_v51 = vadd.f32 %v633_v49, %v2966_v48 }
 0x985   :  { %2541 = vtanh.f32 %v635_v51  ;;  %v2082_v53 = vmul.f32 -1.442695, %v635_v51 }
 0x987   :  { %2543 = vpow2.f32 %v2082_v53 }
 0x98f   :  { %v2542_v52 = vpop.eup %2541 }
 0x990   :  { %648 = vrot.lane.b32.xlu0 %v2542_v52, %s2775_s23 }
 0x991   :  { %v2544_v54 = vpop.eup %2543 }
 0x992   :  { %v639_v55 = vadd.f32 1.0, %v2544_v54 }
 0x994   :  { %2545 = vrcp.f32 %v639_v55 }
 0x99e   :  { %v2546_v56 = vpop.eup %2545 }
 0x99f   :  { %v646_v60 = vmul.f32 %v2546_v56, %v644_v59 }
 0xa02   :  { %v649_v57 = vpop.permute.xlu0 %648 }
 0xa03   :  { %v651_v58 = vmul.f32 %v2546_v56, %v649_v57 }
 0xa05   :  { %653 = vrot.lane.b32.xlu1 %v651_v58, %s2776_s3 }
 0xa77   :  { %v654_v61 = vpop.permute.xlu1 %653 }
 0xa78   :  { %v656_v62 = vadd.f32 %v654_v61, %v646_v60 }
 0xa7a   :  { %2547 = vtanh.f32 %v656_v62  ;;  %v748_v17 = vrot.slane %v656_v62, 6 }
 0xa84   :  { %v2548_v48 = vpop.eup %2547 }
 0xa85   :  { %659 = vrot.lane.b32.xlu0 %v2548_v48, %s2775_s23 }
 0xaf7   :  { %v660_v63 = vpop.permute.xlu0 %659 }
 0xaf8   :  { %v662_v0 = vmul.f32 %v2546_v56, %v660_v63 }
 0xafa   :  { %v664_v3 = vrot.slane %v662_v0, 6  ;;  %v3015_v4 = vsel %vm144_vm7, %v1088_v44, %v662_v0 }
 0xafc   :  { %665 = vrot.lane.b32.xlu1 %v664_v3, %s2776_s3 }
 0xb6e   :  { %v666_v5 = vpop.permute.xlu1 %665 }
 0xb6f   :  { %2262 = vmatmul.mubr.msk.f32.vlgmr.msra.gmra.mrb[4].mxu1 %vm244_vm9, %v666_v5 }
 0xb70   :  { %2438 = vmatpush3.bf16.msra.mxu1 %v2923_v6  ;;  %2283 = vmatprep.mubr.msk.f32.mxu1 %vm2773_vm0, %v2774_v2 }
 0xb71   :  { %2439 = vmatprep.subr.bf16.mxu1 %v2772_v1 }
 0xb74   :  { %2441 = vmatpush3.bf16.msra.mxu1 %v2929_v22 }
 0xc42   :  { %v735_v7 = vpop.f32.mrb[4].mxu1 }
 0xc43   :  { %v739_v8 = vadd.f32 %v735_v7, %v2964_v46  ;;  %v2263_v9 = vpop.f32.mrb[5].mxu1 }
 0xc45   :  { %2549 = vtanh.f32 %v739_v8  ;;  %v2084_v11 = vmul.f32 -1.442695, %v739_v8 }
 0xc47   :  { %2551 = vpow2.f32 %v2084_v11 }
 0xc4f   :  { %v2550_v10 = vpop.eup %2549 }
 0xc50   :  { %752 = vrot.lane.b32.xlu0 %v2550_v10, %s2775_s23 }
 0xc51   :  { %v2552_v12 = vpop.eup %2551 }
 0xc52   :  { %v743_v13 = vadd.f32 1.0, %v2552_v12 }
 0xc54   :  { %2553 = vrcp.f32 %v743_v13 }
 0xc5e   :  { %v2554_v14 = vpop.eup %2553 }
 0xc5f   :  { %v750_v18 = vmul.f32 %v2554_v14, %v748_v17 }
 0xcc2   :  { %v753_v15 = vpop.permute.xlu0 %752 }
 0xcc3   :  { %v755_v16 = vmul.f32 %v2554_v14, %v753_v15 }
 0xcc5   :  { %757 = vrot.lane.b32.xlu1 %v755_v16, %s2776_s3 }
 0xd37   :  { %v758_v19 = vpop.permute.xlu1 %757 }
 0xd38   :  { %v760_v20 = vadd.f32 %v758_v19, %v750_v18 }
 0xd3a   :  { %2555 = vtanh.f32 %v760_v20 }
 0xd44   :  { %v2556_v21 = vpop.eup %2555 }
 0xd45   :  { %763 = vrot.lane.b32.xlu0 %v2556_v21, %s2775_s23 }
 0xdb7   :  { %v764_v23 = vpop.permute.xlu0 %763 }
 0xdb8   :  { %v3028_v24 = vmul.f32 %v2554_v14, %v764_v23  ;;  %v1093_v23 = vld [vmem:[#allocation8] sm:$0xff] }
 0xdba   :  { %768 = vrot.lane.b32.xlu1 %v3028_v24, %s2776_s3 }
 0xe2c   :  { %v769_v25 = vpop.permute.xlu1 %768 }
 0xe2d   :  { %2273 = vmatmul.mubr.msk.f32.vlgmr.msra.gmra.mrb[6].mxu0 %vm244_vm9, %v769_v25  ;;  %v1097_v25 = vld [vmem:[#allocation10] sm:$0xff] }
 0xe2e   :  { %2444 = vmatpush3.bf16.msra.mxu0 %v2923_v6  ;;  %2294 = vmatprep.mubr.msk.f32.mxu0 %vm2773_vm0, %v2774_v2 }
 0xe2f   :  { %2445 = vmatprep.subr.bf16.mxu0 %v2772_v1 }
 0xe32   :  { %2447 = vmatpush3.bf16.msra.mxu0 %v2929_v22  ;;  %v854_v22 = vrot.slane %v760_v20, 6 }
 0xe33   :  { %2456 = vmatprep.subr.bf16.mxu0 %v2772_v1 }
 0xf00   :  { %v838_v26 = vpop.f32.mrb[6].mxu0 }
 0xf01   :  { %v843_v27 = vrot.slane %v838_v26, 6  ;;  %v2274_v28 = vpop.f32.mrb[7].mxu0 }
 0xf02   :  { %v1095_v28 = vld [vmem:[#allocation8 + $0x10] sm:$0xff] }
 0xf03   :  { %v845_v29 = vadd.f32 %v843_v27, %v2964_v46  ;;  %v1098_v27 = vld [vmem:[#allocation10 + $0x8] sm:$0xff] }
 0xf05   :  { %2557 = vtanh.f32 %v845_v29  ;;  %v2086_v31 = vmul.f32 -1.442695, %v845_v29  ;;  %v1096_v29 = vld [vmem:[#allocation8 + $0x18] sm:$0xff] }
 0xf07   :  { %2559 = vpow2.f32 %v2086_v31  ;;  %v2452_v31 = vpack.c.bf16 %v1096_v29, %v1095_v28 }
 0xf0f   :  { %v2558_v30 = vpop.eup %2557 }
 0xf10   :  { %858 = vrot.lane.b32.xlu0 %v2558_v30, %s2775_s23  ;;  %v3062_v30 = vpack.c.bf16 %v1098_v27, %v1097_v25 }
 0xf11   :  { %v2560_v6 = vpop.eup %2559 }
 0xf12   :  { %v849_v32 = vadd.f32 1.0, %v2560_v6  ;;  %v1099_v6 = vld [vmem:[#allocation10 + $0x10] sm:$0xff] }
 0xf14   :  { %2561 = vrcp.f32 %v849_v32 }
 0xf1e   :  { %v2562_v33 = vpop.eup %2561 }
 0xf1f   :  { %v856_v36 = vmul.f32 %v2562_v33, %v854_v22 }
 0xf82   :  { %v859_v34 = vpop.permute.xlu0 %858 }
 0xf83   :  { %v861_v35 = vmul.f32 %v2562_v33, %v859_v34 }
 0xf85   :  { %863 = vrot.lane.b32.xlu1 %v861_v35, %s2776_s3 }
 0xff7   :  { %v864_v37 = vpop.permute.xlu1 %863 }
 0xff8   :  { %v866_v38 = vadd.f32 %v864_v37, %v856_v36 }
 0xffa   :  { %2563 = vtanh.f32 %v866_v38  ;;  %v961_v57 = vrot.slane %v866_v38, 6 }
0x1004   :  { %v2564_v39 = vpop.eup %2563 }
0x1005   :  { %869 = vrot.lane.b32.xlu0 %v2564_v39, %s2775_s23  ;;  %v2091_v39 = vld [vmem:[%s3182_s6] ss:$0 sm:$0xff] }
0x1077   :  { %v870_v40 = vpop.permute.xlu0 %869 }
0x1078   :  { %v872_v41 = vmul.f32 %v2562_v33, %v870_v40 }
0x107a   :  { %v874_v42 = vrot.slane %v872_v41, 2  ;;  %v1090_v63 = vsel %vm140_vm5, %v3028_v24, %v872_v41  ;;  %v1094_v24 = vld [vmem:[#allocation8 + $0x8] sm:$0xff] }
0x107b   :  { %v2448_v26 = vpack.c.bf16 %v1094_v24, %v1093_v23 }
0x107c   :  { %875 = vrot.lane.b32.xlu1 %v874_v42, %s2776_s3 }
0x107d   :  { %2449 = vmatprep.subr.bf16.mxu1 %v2448_v26 }
0x10ee   :  { %v876_v43 = vpop.permute.xlu1 %875 }
0x10ef   :  { %2284 = vmatmul.mubr.msk.f32.vlgmr.msra.gmra.mrb[6].mxu1 %vm244_vm9, %v876_v43 }
0x10f0   :  { %2451 = vmatpush3.bf16.msra.mxu1 %v2448_v26 }
0x10f1   :  { %2453 = vmatprep.subr.bf16.mxu1 %v2452_v31 }
0x10f4   :  { %2455 = vmatpush3.bf16.msra.mxu1 %v2452_v31 }
0x10f5   :  { %2462 = vmatprep.subr.bf16.mxu1 %v2772_v1 }
0x11c2   :  { %v945_v44 = vpop.f32.mrb[6].mxu1 }
0x11c3   :  { %v950_v45 = vrot.slane %v945_v44, 4  ;;  %v2285_v47 = vpop.f32.mrb[7].mxu1 }
0x11c5   :  { %v952_v49 = vadd.f32 %v950_v45, %v2964_v46 }
0x11c7   :  { %2565 = vtanh.f32 %v952_v49  ;;  %v2088_v51 = vmul.f32 -1.442695, %v952_v49 }
0x11c9   :  { %2567 = vpow2.f32 %v2088_v51 }
0x11d1   :  { %v2566_v50 = vpop.eup %2565 }
0x11d2   :  { %965 = vrot.lane.b32.xlu0 %v2566_v50, %s2775_s23 }
0x11d3   :  { %v2568_v52 = vpop.eup %2567 }
0x11d4   :  { %v956_v53 = vadd.f32 1.0, %v2568_v52 }
0x11d6   :  { %2569 = vrcp.f32 %v956_v53 }
0x11e0   :  { %v2570_v54 = vpop.eup %2569 }
0x11e1   :  { %v963_v58 = vmul.f32 %v2570_v54, %v961_v57 }
0x1244   :  { %v966_v55 = vpop.permute.xlu0 %965 }
0x1245   :  { %v968_v56 = vmul.f32 %v2570_v54, %v966_v55 }
0x1247   :  { %970 = vrot.lane.b32.xlu1 %v968_v56, %s2776_s3 }
0x12b9   :  { %v971_v59 = vpop.permute.xlu1 %970 }
0x12ba   :  { %v973_v60 = vadd.f32 %v971_v59, %v963_v58 }
0x12bc   :  { %2571 = vtanh.f32 %v973_v60  ;;  %v1068_v18 = vrot.slane %v973_v60, 6 }
0x12c6   :  { %v2572_v61 = vpop.eup %2571 }
0x12c7   :  { %976 = vrot.lane.b32.xlu0 %v2572_v61, %s2775_s23 }
0x1339   :  { %v977_v62 = vpop.permute.xlu0 %976 }
0x133a   :  { %v979_v48 = vmul.f32 %v2570_v54, %v977_v62 }
0x133c   :  { %v981_v0 = vrot.slane %v979_v48, 4  ;;  %v1091_v3 = vsel %vm142_vm6, %v1090_v63, %v979_v48 }
0x133e   :  { %982 = vrot.lane.b32.xlu1 %v981_v0, %s2776_s3 }
0x13b0   :  { %v983_v5 = vpop.permute.xlu1 %982 }
0x13b1   :  { %2295 = vmatmul.mubr.msk.f32.vlgmr.msra.gmra.mrb[8].mxu0 %vm244_vm9, %v983_v5 }
0x13b2   :  { %2316 = vmatprep.mubr.msk.f32.mxu0 %vm2773_vm0, %v2774_v2  ;;  %2458 = vmatpush3.bf16.msra.mxu0 %v3062_v30 }
0x13b3   :  { %2459 = vmatprep.subr.bf16.mxu0 %v2772_v1 }
0x1484   :  { %v1052_v7 = vpop.f32.mrb[8].mxu0 }
0x1485   :  { %v1057_v8 = vrot.slane %v1052_v7, 2  ;;  %v2296_v9 = vpop.f32.mrb[9].mxu0 }
0x1487   :  { %v1059_v10 = vadd.f32 %v1057_v8, %v2964_v46 }
0x1489   :  { %2573 = vtanh.f32 %v1059_v10  ;;  %v2090_v12 = vmul.f32 -1.442695, %v1059_v10 }
0x148b   :  { %2575 = vpow2.f32 %v2090_v12 }
0x1493   :  { %v2574_v11 = vpop.eup %2573 }
0x1494   :  { %1072 = vrot.lane.b32.xlu0 %v2574_v11, %s2775_s23 }
0x1495   :  { %v2576_v13 = vpop.eup %2575 }
0x1496   :  { %v1063_v14 = vadd.f32 1.0, %v2576_v13 }
0x1498   :  { %2577 = vrcp.f32 %v1063_v14 }
0x14a2   :  { %v2578_v15 = vpop.eup %2577 }
0x14a3   :  { %v1070_v19 = vmul.f32 %v2578_v15, %v1068_v18 }
0x1506   :  { %v1073_v16 = vpop.permute.xlu0 %1072 }
0x1507   :  { %v1075_v17 = vmul.f32 %v2578_v15, %v1073_v16 }
0x1509   :  { %1077 = vrot.lane.b32.xlu1 %v1075_v17, %s2776_s3 }
0x150d   :  { %1110 = vrot.lane.b32.xlu1 %v3015_v4, %s2776_s3  ;;  %v1100_v4 = vld [vmem:[#allocation10 + $0x18] sm:$0xff] }
0x150e   :  { %v3065_v32 = vpack.c.bf16 %v1100_v4, %v1099_v6 }
0x1510   :  { %2461 = vmatpush3.bf16.msra.mxu0 %v3065_v32 }
0x1511   :  { %2468 = vmatprep.subr.bf16.mxu0 %v2772_v1 }
0x1513   :  { %2317 = vmatmul.mubr.f32.vlgmr.msra.gmra.mrb[10].mxu0 %v2774_v2 }
0x1514   :  { %2470 = vmatpush3.bf16.msra.mxu0 %v3062_v30  ;;  %2338 = vmatprep.mubr.msk.f32.mxu0 %vm2773_vm0, %v2774_v2 }
0x1515   :  { %2471 = vmatprep.subr.bf16.mxu0 %v2772_v1 }
0x1518   :  { %2473 = vmatpush3.bf16.msra.mxu0 %v3065_v32 }
0x1519   :  { %2480 = vmatprep.subr.bf16.mxu0 %v2772_v1 }
0x157b   :  { %v1078_v46 = vpop.permute.xlu1 %1077 }
0x157c   :  { %v1080_v20 = vadd.f32 %v1078_v46, %v1070_v19 }
0x157e   :  { %2579 = vtanh.f32 %v1080_v20 }
0x157f   :  { %v1111_v21 = vpop.permute.xlu1 %1110 }
0x1580   :  { %2305 = vmatprep.mubr.msk.f32.mxu1 %vm244_vm9, %v1111_v21 }
0x1588   :  { %v2580_v33 = vpop.eup %2579 }
0x1589   :  { %1083 = vrot.lane.b32.xlu0 %v2580_v33, %s2775_s23 }
0x15e6   :  { %v1259_v37 = vpop.f32.mrb[10].mxu0 }
0x15e7   :  { %v2318_v38 = vpop.f32.mrb[11].mxu0 }
0x15fb   :  { %v1084_v34 = vpop.permute.xlu0 %1083 }
0x15fc   :  { %v1086_v35 = vmul.f32 %v2578_v15, %v1084_v34 }
0x15fe   :  { %v1092_v22 = vsel %vm144_vm7, %v1091_v3, %v1086_v35 }
0x15ff   :  { %1112 = vrot.lane.b32.xlu0 %v1092_v22, %s2776_s3 }
0x1671   :  { %v1113_v36 = vpop.permute.xlu0 %1112 }
0x1672   :  { %2306 = vmatmul.mubr.msk.f32.vlgmr.msra.gmra.mrb[8].mxu1 %vm244_vm9, %v1113_v36 }
0x1673   :  { %2464 = vmatpush3.bf16.msra.mxu1 %v3062_v30  ;;  %2327 = vmatprep.mubr.msk.f32.mxu1 %vm2773_vm0, %v2774_v2 }
0x1674   :  { %2465 = vmatprep.subr.bf16.mxu1 %v2772_v1 }
0x1677   :  { %2467 = vmatpush3.bf16.msra.mxu1 %v3065_v32 }
0x1678   :  { %2474 = vmatprep.subr.bf16.mxu1 %v2772_v1 }
0x1745   :  { %v2307_v40 = vpop.f32.mrb[8].mxu1 }
0x1746   :  { %v3091_v41 = vadd.f32 %v2307_v40, %v2091_v39  ;;  %v1184_v42 = vpop.f32.mrb[9].mxu1 }
0x1747   :  { %v3093_v43 = vadd.f32 %v2091_v39, %v1184_v42 }
0x1749   :  { %v1263_v44 = vadd.f32 %v1259_v37, %v3093_v43 }
0x174b   :  { %2581 = vtanh.f32 %v1263_v44  ;;  %v2094_v47 = vmul.f32 -1.442695, %v1263_v44 }
0x174d   :  { %2583 = vpow2.f32 %v2094_v47 }
0x1755   :  { %v2582_v45 = vpop.eup %2581 }
0x1756   :  { %1273 = vrot.lane.b32.xlu1 %v2582_v45, %s2775_s23 }
0x1757   :  { %v2584_v49 = vpop.eup %2583 }
0x1758   :  { %v1267_v50 = vadd.f32 1.0, %v2584_v49 }
0x175a   :  { %2585 = vrcp.f32 %v1267_v50 }
0x1764   :  { %v2586_v51 = vpop.eup %2585 }
0x1765   :  { %v1271_v54 = vmul.f32 0.0, %v2586_v51 }
0x17c8   :  { %v1274_v52 = vpop.permute.xlu1 %1273 }
0x17c9   :  { %v1276_v53 = vmul.f32 %v2586_v51, %v1274_v52 }
0x17cb   :  { %1278 = vrot.lane.b32.xlu0 %v1276_v53, %s2776_s3 }
0x183d   :  { %v1279_v55 = vpop.permute.xlu0 %1278 }
0x183e   :  { %v1281_v56 = vadd.f32 %v1279_v55, %v1271_v54 }
0x1840   :  { %2587 = vtanh.f32 %v1281_v56  ;;  %v1375_v11 = vrot.slane %v1281_v56, 6 }
0x184a   :  { %v2588_v57 = vpop.eup %2587 }
0x184b   :  { %1284 = vrot.lane.b32.xlu1 %v2588_v57, %s2775_s23 }
0x18bd   :  { %v1285_v58 = vpop.permute.xlu1 %1284 }
0x18be   :  { %v1287_v59 = vmul.f32 %v2586_v51, %v1285_v58 }
0x18c0   :  { %1289 = vrot.lane.b32.xlu0 %v1287_v59, %s2776_s3 }
0x1932   :  { %v1290_v60 = vpop.permute.xlu0 %1289 }
0x1933   :  { %2328 = vmatmul.mubr.msk.f32.vlgmr.msra.gmra.mrb[10].mxu1 %vm244_vm9, %v1290_v60 }
0x1934   :  { %2476 = vmatpush3.bf16.msra.mxu1 %v3062_v30  ;;  %2349 = vmatprep.mubr.msk.f32.mxu1 %vm2773_vm0, %v2774_v2 }
0x1935   :  { %2477 = vmatprep.subr.bf16.mxu1 %v2772_v1 }
0x1938   :  { %2479 = vmatpush3.bf16.msra.mxu1 %v3065_v32 }
0x1939   :  { %2486 = vmatprep.subr.bf16.mxu1 %v2772_v1 }
0x1a06   :  { %v1359_v61 = vpop.f32.mrb[10].mxu1 }
0x1a07   :  { %v1364_v62 = vrot.slane %v1359_v61, 6  ;;  %v2329_v48 = vpop.f32.mrb[11].mxu1 }
0x1a09   :  { %v1366_v63 = vadd.f32 %v1364_v62, %v3093_v43 }
0x1a0b   :  { %2589 = vtanh.f32 %v1366_v63  ;;  %v2096_v3 = vmul.f32 -1.442695, %v1366_v63 }
0x1a0d   :  { %2591 = vpow2.f32 %v2096_v3 }
0x1a15   :  { %v2590_v0 = vpop.eup %2589 }
0x1a16   :  { %1379 = vrot.lane.b32.xlu1 %v2590_v0, %s2775_s23 }
0x1a17   :  { %v2592_v5 = vpop.eup %2591 }
0x1a18   :  { %v1370_v7 = vadd.f32 1.0, %v2592_v5 }
0x1a1a   :  { %2593 = vrcp.f32 %v1370_v7 }
0x1a24   :  { %v2594_v8 = vpop.eup %2593 }
0x1a25   :  { %v1377_v12 = vmul.f32 %v2594_v8, %v1375_v11 }
0x1a88   :  { %v1380_v9 = vpop.permute.xlu1 %1379 }
0x1a89   :  { %v1382_v10 = vmul.f32 %v2594_v8, %v1380_v9 }
0x1a8b   :  { %1384 = vrot.lane.b32.xlu0 %v1382_v10, %s2776_s3 }
0x1afd   :  { %v1385_v13 = vpop.permute.xlu0 %1384 }
0x1afe   :  { %v1387_v14 = vadd.f32 %v1385_v13, %v1377_v12 }
0x1b00   :  { %2595 = vtanh.f32 %v1387_v14  ;;  %v1482_v6 = vrot.slane %v1387_v14, 6 }
0x1b0a   :  { %v2596_v15 = vpop.eup %2595 }
0x1b0b   :  { %1390 = vrot.lane.b32.xlu1 %v2596_v15, %s2775_s23 }
0x1b7d   :  { %v1391_v16 = vpop.permute.xlu1 %1390 }
0x1b7e   :  { %v1393_v17 = vmul.f32 %v2594_v8, %v1391_v16 }
0x1b80   :  { %v1395_v18 = vrot.slane %v1393_v17, 2 }
0x1b82   :  { %1396 = vrot.lane.b32.xlu0 %v1395_v18, %s2776_s3 }
0x1bf4   :  { %v1397_v19 = vpop.permute.xlu0 %1396 }
0x1bf5   :  { %2339 = vmatmul.mubr.msk.f32.vlgmr.msra.gmra.mrb[12].mxu0 %vm244_vm9, %v1397_v19 }
0x1bf6   :  { %2482 = vmatpush3.bf16.msra.mxu0 %v3062_v30  ;;  %2360 = vmatprep.mubr.msk.f32.mxu0 %vm2773_vm0, %v2774_v2 }
0x1bf7   :  { %2483 = vmatprep.subr.bf16.mxu0 %v2772_v1 }
0x1bfa   :  { %2485 = vmatpush3.bf16.msra.mxu0 %v3065_v32 }
0x1bfb   :  { %2492 = vmatprep.subr.bf16.mxu0 %v2772_v1 }
0x1cc8   :  { %v1466_v46 = vpop.f32.mrb[12].mxu0 }
0x1cc9   :  { %v1471_v20 = vrot.slane %v1466_v46, 4  ;;  %v2340_v21 = vpop.f32.mrb[13].mxu0 }
0x1ccb   :  { %v1473_v23 = vadd.f32 %v1471_v20, %v3093_v43 }
0x1ccd   :  { %2597 = vtanh.f32 %v1473_v23  ;;  %v2098_v25 = vmul.f32 -1.442695, %v1473_v23 }
0x1ccf   :  { %2599 = vpow2.f32 %v2098_v25 }
0x1cd7   :  { %v2598_v24 = vpop.eup %2597 }
0x1cd8   :  { %1486 = vrot.lane.b32.xlu1 %v2598_v24, %s2775_s23 }
0x1cd9   :  { %v2600_v26 = vpop.eup %2599 }
0x1cda   :  { %v1477_v27 = vadd.f32 1.0, %v2600_v26 }
0x1cdc   :  { %2601 = vrcp.f32 %v1477_v27 }
0x1ce6   :  { %v2602_v28 = vpop.eup %2601 }
0x1ce7   :  { %v1484_v4 = vmul.f32 %v2602_v28, %v1482_v6 }
0x1d4a   :  { %v1487_v29 = vpop.permute.xlu1 %1486 }
0x1d4b   :  { %v1489_v31 = vmul.f32 %v2602_v28, %v1487_v29 }
0x1d4d   :  { %1491 = vrot.lane.b32.xlu0 %v1489_v31, %s2776_s3 }
0x1dbf   :  { %v1492_v33 = vpop.permute.xlu0 %1491 }
0x1dc0   :  { %v1494_v34 = vadd.f32 %v1492_v33, %v1484_v4 }
0x1dc2   :  { %2603 = vtanh.f32 %v1494_v34  ;;  %v1589_v54 = vrot.slane %v1494_v34, 6 }
0x1dcc   :  { %v2604_v35 = vpop.eup %2603 }
0x1dcd   :  { %1497 = vrot.lane.b32.xlu1 %v2604_v35, %s2775_s23 }
0x1e3f   :  { %v1498_v22 = vpop.permute.xlu1 %1497 }
0x1e40   :  { %v1500_v36 = vmul.f32 %v2602_v28, %v1498_v22 }
0x1e42   :  { %v1502_v37 = vrot.slane %v1500_v36, 4 }
0x1e44   :  { %1503 = vrot.lane.b32.xlu0 %v1502_v37, %s2776_s3 }
0x1eb6   :  { %v1504_v38 = vpop.permute.xlu0 %1503 }
0x1eb7   :  { %2350 = vmatmul.mubr.msk.f32.vlgmr.msra.gmra.mrb[12].mxu1 %vm244_vm9, %v1504_v38 }
0x1eb8   :  { %2488 = vmatpush3.bf16.msra.mxu1 %v3062_v30  ;;  %2371 = vmatprep.mubr.msk.f32.mxu1 %vm2773_vm0, %v2774_v2 }
0x1eb9   :  { %2489 = vmatprep.subr.bf16.mxu1 %v2772_v1 }
0x1ebc   :  { %2491 = vmatpush3.bf16.msra.mxu1 %v3065_v32 }
0x1ebd   :  { %2498 = vmatprep.subr.bf16.mxu1 %v2772_v1 }
0x1f8a   :  { %v1573_v39 = vpop.f32.mrb[12].mxu1 }
0x1f8b   :  { %v1578_v40 = vrot.slane %v1573_v39, 2  ;;  %v2351_v42 = vpop.f32.mrb[13].mxu1 }
0x1f8d   :  { %v1580_v44 = vadd.f32 %v1578_v40, %v3093_v43 }
0x1f8f   :  { %2605 = vtanh.f32 %v1580_v44  ;;  %v2100_v47 = vmul.f32 -1.442695, %v1580_v44 }
0x1f91   :  { %2607 = vpow2.f32 %v2100_v47 }
0x1f99   :  { %v2606_v45 = vpop.eup %2605 }
0x1f9a   :  { %1593 = vrot.lane.b32.xlu1 %v2606_v45, %s2775_s23 }
0x1f9b   :  { %v2608_v49 = vpop.eup %2607 }
0x1f9c   :  { %v1584_v50 = vadd.f32 1.0, %v2608_v49 }
0x1f9e   :  { %2609 = vrcp.f32 %v1584_v50 }
0x1fa8   :  { %v2610_v51 = vpop.eup %2609 }
0x1fa9   :  { %v1591_v55 = vmul.f32 %v2610_v51, %v1589_v54 }
0x200c   :  { %v1594_v52 = vpop.permute.xlu1 %1593 }
0x200d   :  { %v1596_v53 = vmul.f32 %v2610_v51, %v1594_v52 }
0x200f   :  { %1598 = vrot.lane.b32.xlu0 %v1596_v53, %s2776_s3 }
0x2081   :  { %v1599_v56 = vpop.permute.xlu0 %1598 }
0x2082   :  { %v1601_v57 = vadd.f32 %v1599_v56, %v1591_v55 }
0x2084   :  { %2611 = vtanh.f32 %v1601_v57  ;;  %v1693_v11 = vrot.slane %v1601_v57, 6 }
0x208e   :  { %v2612_v43 = vpop.eup %2611 }
0x208f   :  { %1604 = vrot.lane.b32.xlu1 %v2612_v43, %s2775_s23 }
0x2101   :  { %v1605_v58 = vpop.permute.xlu1 %1604 }
0x2102   :  { %v1607_v59 = vmul.f32 %v2610_v51, %v1605_v58 }
0x2104   :  { %v1609_v60 = vrot.slane %v1607_v59, 6 }
0x2106   :  { %1610 = vrot.lane.b32.xlu0 %v1609_v60, %s2776_s3 }
0x2178   :  { %v1611_v61 = vpop.permute.xlu0 %1610 }
0x2179   :  { %2361 = vmatmul.mubr.msk.f32.vlgmr.msra.gmra.mrb[14].mxu0 %vm244_vm9, %v1611_v61 }
0x217a   :  { %2494 = vmatpush3.bf16.msra.mxu0 %v3062_v30  ;;  %2382 = vmatprep.mubr.msk.f32.mxu0 %vm2773_vm0, %v2774_v2 }
0x217b   :  { %2495 = vmatprep.subr.bf16.mxu0 %v2772_v1 }
0x217e   :  { %2497 = vmatpush3.bf16.msra.mxu0 %v3065_v32 }
0x224c   :  { %v1680_v62 = vpop.f32.mrb[14].mxu0 }
0x224d   :  { %v1684_v48 = vadd.f32 %v1680_v62, %v3091_v41  ;;  %v2362_v63 = vpop.f32.mrb[15].mxu0 }
0x224f   :  { %2613 = vtanh.f32 %v1684_v48  ;;  %v2102_v3 = vmul.f32 -1.442695, %v1684_v48 }
0x2251   :  { %2615 = vpow2.f32 %v2102_v3 }
0x2259   :  { %v2614_v0 = vpop.eup %2613 }
0x225a   :  { %1697 = vrot.lane.b32.xlu1 %v2614_v0, %s2775_s23 }
0x225b   :  { %v2616_v5 = vpop.eup %2615 }
0x225c   :  { %v1688_v7 = vadd.f32 1.0, %v2616_v5 }
0x225e   :  { %2617 = vrcp.f32 %v1688_v7  ;;  %v2109_v7 = vld [vmem:[%s3183_s7] ss:$0 sm:$0xff] }
0x2268   :  { %v2618_v8 = vpop.eup %2617 }
0x2269   :  { %v1695_v12 = vmul.f32 %v2618_v8, %v1693_v11 }
0x22cc   :  { %v1698_v9 = vpop.permute.xlu1 %1697 }
0x22cd   :  { %v1700_v10 = vmul.f32 %v2618_v8, %v1698_v9 }
0x22cf   :  { %1702 = vrot.lane.b32.xlu0 %v1700_v10, %s2776_s3 }
0x2341   :  { %v1703_v13 = vpop.permute.xlu0 %1702 }
0x2342   :  { %v1705_v14 = vadd.f32 %v1703_v13, %v1695_v12 }
0x2344   :  { %2619 = vtanh.f32 %v1705_v14 }
0x234e   :  { %v2620_v15 = vpop.eup %2619 }
0x234f   :  { %1708 = vrot.lane.b32.xlu1 %v2620_v15, %s2775_s23 }
0x23c1   :  { %v1709_v16 = vpop.permute.xlu1 %1708 }
0x23c2   :  { %v1711_v17 = vmul.f32 %v2618_v8, %v1709_v16 }
0x23c4   :  { %1713 = vrot.lane.b32.xlu0 %v1711_v17, %s2776_s3 }
0x2436   :  { %v1714_v18 = vpop.permute.xlu0 %1713 }
0x2437   :  { %2372 = vmatmul.mubr.msk.f32.vlgmr.msra.gmra.mrb[14].mxu1 %vm244_vm9, %v1714_v18  ;;  %v2110_v18 = vld [vmem:[#allocation2] ss:$0 sm:$0xff] }
0x2438   :  { %2500 = vmatpush3.bf16.msra.mxu1 %v3062_v30  ;;  %2393 = vmatprep.mubr.msk.f32.mxu1 %vm2773_vm0, %v2774_v2 }
0x2439   :  { %2501 = vmatprep.subr.bf16.mxu1 %v2772_v1  ;;  %v1799_v1 = vrot.slane %v1705_v14, 6 }
0x243c   :  { %2503 = vmatpush3.bf16.msra.mxu1 %v3065_v32 }
0x250a   :  { %v1783_v19 = vpop.f32.mrb[14].mxu1 }
0x250b   :  { %v1788_v46 = vrot.slane %v1783_v19, 6  ;;  %v2373_v20 = vpop.f32.mrb[15].mxu1 }
0x250d   :  { %v1790_v21 = vadd.f32 %v1788_v46, %v3091_v41 }
0x250f   :  { %2621 = vtanh.f32 %v1790_v21  ;;  %v2104_v24 = vmul.f32 -1.442695, %v1790_v21 }
0x2511   :  { %2623 = vpow2.f32 %v2104_v24 }
0x2519   :  { %v2622_v23 = vpop.eup %2621 }
0x251a   :  { %1803 = vrot.lane.b32.xlu1 %v2622_v23, %s2775_s23 }
0x251b   :  { %v2624_v25 = vpop.eup %2623 }
0x251c   :  { %v1794_v30 = vadd.f32 1.0, %v2624_v25 }
0x251e   :  { %2625 = vrcp.f32 %v1794_v30 }
0x2528   :  { %v2626_v26 = vpop.eup %2625 }
0x2529   :  { %v1801_v32 = vmul.f32 %v2626_v26, %v1799_v1 }
0x258c   :  { %v1804_v2 = vpop.permute.xlu1 %1803 }
0x258d   :  { %v1806_v27 = vmul.f32 %v2626_v26, %v1804_v2 }
0x258f   :  { %1808 = vrot.lane.b32.xlu0 %v1806_v27, %s2776_s3 }
0x2601   :  { %v1809_v28 = vpop.permute.xlu0 %1808 }
0x2602   :  { %v1811_v29 = vadd.f32 %v1809_v28, %v1801_v32 }
0x2604   :  { %2627 = vtanh.f32 %v1811_v29  ;;  %v1906_v49 = vrot.slane %v1811_v29, 6 }
0x260e   :  { %v2628_v31 = vpop.eup %2627 }
0x260f   :  { %1814 = vrot.lane.b32.xlu1 %v2628_v31, %s2775_s23 }
0x2681   :  { %v1815_v6 = vpop.permute.xlu1 %1814 }
0x2682   :  { %v1817_v4 = vmul.f32 %v2626_v26, %v1815_v6 }
0x2684   :  { %v1819_v33 = vrot.slane %v1817_v4, 2 }
0x2686   :  { %1820 = vrot.lane.b32.xlu0 %v1819_v33, %s2776_s3 }
0x26f8   :  { %v1821_v34 = vpop.permute.xlu0 %1820 }
0x26f9   :  { %2383 = vmatmul.mubr.msk.f32.vlgmr.msra.gmra.mrb[16].mxu0 %vm244_vm9, %v1821_v34 }
0x27cc   :  { %v1890_v35 = vpop.f32.mrb[16].mxu0 }
0x27cd   :  { %v1895_v22 = vrot.slane %v1890_v35, 4  ;;  %v2384_v36 = vpop.f32.mrb[17].mxu0 }
0x27cf   :  { %v1897_v37 = vadd.f32 %v1895_v22, %v3091_v41 }
0x27d1   :  { %2629 = vtanh.f32 %v1897_v37  ;;  %v2106_v39 = vmul.f32 -1.442695, %v1897_v37 }
0x27d3   :  { %2631 = vpow2.f32 %v2106_v39 }
0x27db   :  { %v2630_v38 = vpop.eup %2629 }
0x27dc   :  { %1910 = vrot.lane.b32.xlu1 %v2630_v38, %s2775_s23 }
0x27dd   :  { %v2632_v40 = vpop.eup %2631 }
0x27de   :  { %v1901_v42 = vadd.f32 1.0, %v2632_v40 }
0x27e0   :  { %2633 = vrcp.f32 %v1901_v42 }
0x27ea   :  { %v2634_v44 = vpop.eup %2633 }
0x27eb   :  { %v1908_v50 = vmul.f32 %v2634_v44, %v1906_v49 }
0x284e   :  { %v1911_v45 = vpop.permute.xlu1 %1910 }
0x284f   :  { %v1913_v47 = vmul.f32 %v2634_v44, %v1911_v45 }
0x2851   :  { %1915 = vrot.lane.b32.xlu0 %v1913_v47, %s2776_s3 }
0x28c3   :  { %v1916_v51 = vpop.permute.xlu0 %1915 }
0x28c4   :  { %v1918_v52 = vadd.f32 %v1916_v51, %v1908_v50 }
0x28c6   :  { %2635 = vtanh.f32 %v1918_v52 }
0x28d0   :  { %v2636_v53 = vpop.eup %2635 }
0x28d1   :  { %1921 = vrot.lane.b32.xlu1 %v2636_v53, %s2775_s23 }
0x2943   :  { %v1922_v54 = vpop.permute.xlu1 %1921 }
0x2944   :  { %v1924_v55 = vmul.f32 %v2634_v44, %v1922_v54 }
0x2946   :  { %v1926_v56 = vrot.slane %v1924_v55, 4 }
0x2948   :  { %1927 = vrot.lane.b32.xlu0 %v1926_v56, %s2776_s3 }
0x29ba   :  { %v1928_v57 = vpop.permute.xlu0 %1927 }
0x29bb   :  { %2394 = vmatmul.mubr.msk.f32.vlgmr.msra.gmra.mrb[16].mxu1 %vm244_vm9, %v1928_v57 }
0x2a8e   :  { %v1997_v43 = vpop.f32.mrb[16].mxu1 }
0x2a8f   :  { %v2002_v58 = vrot.slane %v1997_v43, 2  ;;  %v2395_v59 = vpop.f32.mrb[17].mxu1 }
0x2a91   :  { %v2004_v60 = vadd.f32 %v2002_v58, %v3091_v41  ;;  %v2013_v41 = vrot.slane %v1918_v52, 6 }
0x2a93   :  { %2637 = vtanh.f32 %v2004_v60  ;;  %v2108_v62 = vmul.f32 -1.442695, %v2004_v60 }
0x2a95   :  { %2639 = vpow2.f32 %v2108_v62 }
0x2a9d   :  { %v2638_v61 = vpop.eup %2637 }
0x2a9e   :  { %2017 = vrot.lane.b32.xlu1 %v2638_v61, %s2775_s23 }
0x2a9f   :  { %v2640_v48 = vpop.eup %2639 }
0x2aa0   :  { %v2008_v63 = vadd.f32 1.0, %v2640_v48 }
0x2aa2   :  { %2641 = vrcp.f32 %v2008_v63 }
0x2aac   :  { %v2642_v0 = vpop.eup %2641 }
0x2aad   :  { %v2015_v8 = vmul.f32 %v2642_v0, %v2013_v41 }
0x2b10   :  { %v2018_v3 = vpop.permute.xlu1 %2017 }
0x2b11   :  { %v2020_v5 = vmul.f32 %v2642_v0, %v2018_v3 }
0x2b13   :  { %2022 = vrot.lane.b32.xlu0 %v2020_v5, %s2776_s3 }
0x2b17   :  { %2038 = vrot.lane.b32.xlu0 %v2109_v7, %s2777_s29 }
0x2b85   :  { %v2023_v9 = vpop.permute.xlu0 %2022 }
0x2b86   :  { %v2025_v10 = vadd.f32 %v2023_v9, %v2015_v8 }
0x2b88   :  { %2643 = vtanh.f32 %v2025_v10 }
0x2b89   :  { %v2039_v13 = vpop.permute.xlu0 %2038 }
0x2b92   :  { %v2644_v11 = vpop.eup %2643 }
0x2b93   :  { %2028 = vrot.lane.b32.xlu1 %v2644_v11, %s2775_s23 }
0x2c05   :  { %v2029_v12 = vpop.permute.xlu1 %2028 }
0x2c06   :  { %v2031_v14 = vmul.f32 %v2642_v0, %v2029_v12 }
0x2c08   :  { %v2041_v15 = vmul.f32 %v2039_v13, %v2031_v14 }
0x2c0a   :  { %2043 = vrot.lane.b32.xlu1 %v2041_v15, %s2776_s3 }
0x2c7c   :  { %v2044_v16 = vpop.permute.xlu1 %2043 }
0x2c7d   :  { %v2047_v17 = vsel %vm2046_vm10, %v2044_v16, 0.0 }
0x2c7e   :  { %2048 = vadd.xlane.f32.xlu0 %v2047_v17 }
0x2d0b   :  { %v2049_v19 = vpop.xlane.xlu0 %2048 }
0x2d0c   :  { %v2057_v46 = vadd.f32 %v2110_v18, %v2049_v19 }
0x2d0e   :  { %v2111_v20 = vmul.f32 -1.442695, %v2057_v46 }
0x2d10   :  { %2645 = vpow2.f32 %v2111_v20 }
0x2d1a   :  { %v2646_v21 = vpop.eup %2645 }
0x2d1b   :  { %v2061_v23 = vadd.f32 1.0, %v2646_v21 }
0x2d1d   :  { %2647 = vrcp.f32 %v2061_v23 }
0x2d27   :  { %v2648_v24 = vpop.eup %2647 }
0x2d28   :  { %2065 = vst.msk [vmem:[%s3185_s9 - $0x6] sm:$0xc0] %vm2064_vm11, %v2648_v24 }
0x2d29   :  { %2070 = vsyncpa [#allocation4], 1 }
0x2d2a   :  { %2071 = vsyncpa [#allocation6], 1 }
0x2d2b   :  { %2072 = vsyncpa [#allocation9], 1 }

</bundles_post_ra>
